<compile_context>
chip_gen: v7x
topology: tpu7x:2x2x1
jax: 0.10.0
libtpu: 0.0.40
codegen_flags: <defaults>
</compile_context>

<pallas_src>
import numpy as np
import jax
import jax.numpy as jnp
from jax import lax
from jax.experimental import pallas as pl
from jax.experimental.pallas import tpu as pltpu


# ---------------- fixed geometry implied by the module (fc1 = 16*7*7) -------
H1, W1 = 28, 28          # conv1 spatial size
WP1 = W1 + 2             # 30  padded width, layer 1
L1 = H1 * WP1            # 840 conv1 output columns (incl. 2 garbage cols/row)
XLEN1 = (H1 + 3) * WP1   # 930 flattened padded input length, layer 1
H2, W2 = 14, 14          # conv2 spatial size (after pool1)
WP2 = W2 + 2             # 16
L2 = H2 * WP2            # 224
XLEN2 = (H2 + 3) * WP2   # 272 flattened padded input length, layer 2
H3, W3 = 7, 7            # spatial size after pool2
C1, C2 = 8, 16           # conv output channels
NFEAT = C2 * H3 * W3     # 784
NUM_CLASSES = 10
PAD_CLASSES = 128        # lane-dense fc output; sliced to NUM_CLASSES outside
N1 = L1 - WP1 - 1        # 809 valid 2x2-window-max columns, layer 1
N2 = L2 - WP2 - 1        # 207 valid 2x2-window-max columns, layer 2


# ------------------------------ fused kernel --------------------------------
def _cnn_kernel(x_ref, w1_ref, b1_ref, s1_ref, w2_ref, b2_ref, s2_ref,
                wfc_ref, bfc_ref, o_ref):
    # ---- conv1 (3x3, pad 1) + bias + ReLU ----------------------------------
    # x: (Cin, 930) = zero-padded 31x30 image, flattened row-major on lanes.
    # Tap (dy,dx) of output position o = y*30+x is just x[:, o + dy*30 + dx].
    x = x_ref[0]                                               # (Cin, 930) f32
    patches1 = jnp.concatenate(
        [x[:, dy * WP1 + dx: dy * WP1 + dx + L1]
         for dy in range(3) for dx in range(3)],
        axis=0).astype(jnp.bfloat16)                           # (9*Cin, 840)
    act1 = jnp.dot(w1_ref[...], patches1,
                   preferred_element_type=jnp.float32)         # (8, 840)
    act1 = jnp.maximum(act1 + b1_ref[...], 0.0)

    # ---- maxpool 2x2 fused: 4-slice window max + selection matmul ----------
    # wmax1[:, o] = max of the 2x2 window whose top-left flat index is o.
    wmax1 = jnp.maximum(
        jnp.maximum(act1[:, 0:N1], act1[:, 1:N1 + 1]),
        jnp.maximum(act1[:, WP1:WP1 + N1], act1[:, WP1 + 1:WP1 + 1 + N1]))
    # 0/1 matrix keeps even-row/even-col windows and scatters them straight
    # into the zero-padded flattened layout of layer 2 (lane-dense MXU matmul).
    p1 = jnp.dot(wmax1.astype(jnp.bfloat16), s1_ref[...],
                 preferred_element_type=jnp.float32)           # (8, 272)

    # ---- conv2 (3x3, pad 1) + bias + ReLU ----------------------------------
    patches2 = jnp.concatenate(
        [p1[:, dy * WP2 + dx: dy * WP2 + dx + L2]
         for dy in range(3) for dx in range(3)],
        axis=0).astype(jnp.bfloat16)                           # (72, 224)
    act2 = jnp.dot(w2_ref[...], patches2,
                   preferred_element_type=jnp.float32)         # (16, 224)
    act2 = jnp.maximum(act2 + b2_ref[...], 0.0)

    # ---- maxpool 2x2 fused --------------------------------------------------
    wmax2 = jnp.maximum(
        jnp.maximum(act2[:, 0:N2], act2[:, 1:N2 + 1]),
        jnp.maximum(act2[:, WP2:WP2 + N2], act2[:, WP2 + 1:WP2 + 1 + N2]))
    feat = jnp.dot(wmax2.astype(jnp.bfloat16), s2_ref[...],
                   preferred_element_type=jnp.float32)         # (16, 49)

    # ---- fc1: out[k] = b[k] + sum_c feat[c,:] @ Wfc[c,:,k] ------------------
    # (classes padded to 128 lanes -> the only HBM store is a dense 128-lane row)
    featb = feat.astype(jnp.bfloat16)
    acc = bfc_ref[...]                                         # (1, 128) f32
    for c in range(C2):
        acc = acc + jnp.dot(featb[c:c + 1, :], wfc_ref[c],
                            preferred_element_type=jnp.float32)
    o_ref[0] = acc                                             # (1, 128)


# --------------------------- parameter preparation --------------------------
def _pool_select(h_in, wp_in, h_out, w_out, n_out_cols, dst_index):
    """0/1 matrix: picks the window max of each even (row, col) 2x2 window out
    of the window-max vector and scatters it into the (zero-padded) flattened
    layout expected by the next layer. Downsample + re-pad = one MXU matmul."""
    n_rows = h_in * wp_in - wp_in - 1
    s = np.zeros((n_rows, n_out_cols), dtype=np.float32)
    for y2 in range(h_out):
        for x2 in range(w_out):
            s[(2 * y2) * wp_in + 2 * x2, dst_index(y2, x2)] = 1.0
    return jnp.asarray(s, dtype=jnp.bfloat16)   # 0/1 are exact in bf16


def init_params(key, in_channels=1, num_classes=NUM_CLASSES):
    """PyTorch-layout float32 parameters (same shapes as the nn.Module)."""
    k1, k2, k3, k4, k5, k6 = jax.random.split(key, 6)
    return {
        "conv1_w": 0.1 * jax.random.normal(k1, (C1, in_channels, 3, 3), jnp.float32),
        "conv1_b": 0.1 * jax.random.normal(k2, (C1,), jnp.float32),
        "conv2_w": 0.1 * jax.random.normal(k3, (C2, C1, 3, 3), jnp.float32),
        "conv2_b": 0.1 * jax.random.normal(k4, (C2,), jnp.float32),
        "fc1_w": 0.05 * jax.random.normal(k5, (num_classes, NFEAT), jnp.float32),
        "fc1_b": 0.05 * jax.random.normal(k6, (num_classes,), jnp.float32),
    }


def prepare_params(params):
    """One-time repack of PyTorch-layout params into the kernel layout
    (bf16 matmul operands, f32 biases) -- hoisted out of the forward path."""
    cin = params["conv1_w"].shape[1]
    # conv weights: (Cout, Cin, 3, 3) -> (Cout, (dy*3+dx)*Cin + ci)
    w1 = jnp.transpose(params["conv1_w"], (0, 2, 3, 1)).reshape(C1, 9 * cin)
    w2 = jnp.transpose(params["conv2_w"], (0, 2, 3, 1)).reshape(C2, 9 * C1)
    # fc weight: (10, 16*49) -> (16, 49, 10) -> pad classes to 128
    wfc = params["fc1_w"].reshape(NUM_CLASSES, C2, H3 * W3).transpose(1, 2, 0)
    wfc = jnp.pad(wfc, ((0, 0), (0, 0), (0, PAD_CLASSES - NUM_CLASSES)))
    bfc = jnp.pad(params["fc1_b"], (0, PAD_CLASSES - NUM_CLASSES))
    return {
        "w1": w1.astype(jnp.bfloat16),
        "b1": params["conv1_b"].reshape(C1, 1).astype(jnp.float32),
        "s1": _pool_select(H1, WP1, H2, W2, XLEN2,
                           lambda y2, x2: (y2 + 1) * WP2 + (x2 + 1)),
        "w2": w2.astype(jnp.bfloat16),
        "b2": params["conv2_b"].reshape(C2, 1).astype(jnp.float32),
        "s2": _pool_select(H2, WP2, H3, W3, H3 * W3,
                           lambda y2, x2: y2 * W3 + x2),
        "wfc": wfc.astype(jnp.bfloat16),
        "bfc": bfc.reshape(1, PAD_CLASSES).astype(jnp.float32),
    }


# --------------------------------- forward ----------------------------------
@jax.jit
def cnn_forward(x_nchw, prep):
    b, cin, h, w = x_nchw.shape
    assert (h, w) == (H1, W1), "fc1 of the module fixes the input to 28x28"
    # Only glue: zero-pad (top 1, bottom 2, left/right 1) and flatten each
    # padded image row-major onto the lane axis.
    xf = jnp.pad(x_nchw, ((0, 0), (0, 0), (1, 2), (1, 1))).reshape(b, cin, XLEN1)

    out = pl.pallas_call(
        _cnn_kernel,
        out_shape=jax.ShapeDtypeStruct((b, 1, PAD_CLASSES), jnp.float32),
        grid=(b,),
        in_specs=[
            pl.BlockSpec((1, cin, XLEN1), lambda i: (i, 0, 0)),   # image i
            pl.BlockSpec((C1, 9 * cin), lambda i: (0, 0)),        # w1
            pl.BlockSpec((C1, 1), lambda i: (0, 0)),              # b1
            pl.BlockSpec((N1, XLEN2), lambda i: (0, 0)),          # pool1 select
            pl.BlockSpec((C2, 9 * C1), lambda i: (0, 0)),         # w2
            pl.BlockSpec((C2, 1), lambda i: (0, 0)),              # b2
            pl.BlockSpec((N2, H3 * W3), lambda i: (0, 0)),        # pool2 select
            pl.BlockSpec((C2, H3 * W3, PAD_CLASSES), lambda i: (0, 0, 0)),  # fc w
            pl.BlockSpec((1, PAD_CLASSES), lambda i: (0, 0)),     # fc b
        ],
        out_specs=pl.BlockSpec((1, 1, PAD_CLASSES), lambda i: (i, 0, 0)),
        compiler_params=pltpu.CompilerParams(
            dimension_semantics=("parallel",),        # dual-TC on v7x
            vmem_limit_bytes=32 * 1024 * 1024,        # fits v7x's 64 MiB VMEM
        ),
    )(xf, prep["w1"], prep["b1"], prep["s1"], prep["w2"], prep["b2"],
      prep["s2"], prep["wfc"], prep["bfc"])
    return out[:, 0, :NUM_CLASSES]


# ------------------------------ f32 reference --------------------------------
def cnn_reference(x, params):
    """Pure-JAX float32 reference implementing the PyTorch module exactly."""
    hp = lax.Precision.HIGHEST

    def conv3x3(x, w, b):
        y = lax.conv_general_dilated(x, w, window_strides=(1, 1),
                                     padding=((1, 1), (1, 1)),
                                     dimension_numbers=("NCHW", "OIHW", "NCHW"),
                                     precision=hp)
        return y + b[None, :, None, None]

    def pool2x2(x):
        b, c, h, w = x.shape
        return x.reshape(b, c, h // 2, 2, w // 2, 2).max(axis=(3, 5))

    y = pool2x2(jax.nn.relu(conv3x3(x, params["conv1_w"], params["conv1_b"])))
    y = pool2x2(jax.nn.relu(conv3x3(y, params["conv2_w"], params["conv2_b"])))
    feat = y.reshape(x.shape[0], -1)
    return jnp.dot(feat, params["fc1_w"].T, precision=hp) + params["fc1_b"]


if __name__ == "__main__":
    key = jax.random.PRNGKey(0)
    kx, kp = jax.random.split(key)
    batch, in_channels = 2, 1
    # fc1 expects 16*7*7 features -> input spatial size must be 28x28.
    x = jax.random.normal(kx, (batch, in_channels, H1, W1), jnp.float32)

    params = init_params(kp, in_channels=in_channels, num_classes=NUM_CLASSES)
    prep = prepare_params(params)          # one-time weight repack (hoisted)

    out = jax.block_until_ready(cnn_forward(x, prep))
    assert out.shape == (batch, NUM_CLASSES)

    # bf16 MXU operands (f32 accumulation) => small numeric delta vs f32 ref.
    ref = jax.block_until_ready(cnn_reference(x, params))
    err = float(jnp.max(jnp.abs(out - ref)))
    assert err < 8e-2, f"mismatch vs reference: max abs err {err}"
    print("KERNEL_OK")
</pallas_src>

<mosaic_0001>
module attributes {stable_mosaic.version = 11 : i64} {
  func.func @_cnn_kernel(%arg0: i32, %arg1: memref<1x1x930xf32, #tpu.memory_space<vmem>>, %arg2: memref<8x9xbf16, #tpu.memory_space<vmem>>, %arg3: memref<8x1xf32, #tpu.memory_space<vmem>>, %arg4: memref<809x272xbf16, #tpu.memory_space<vmem>>, %arg5: memref<16x72xbf16, #tpu.memory_space<vmem>>, %arg6: memref<16x1xf32, #tpu.memory_space<vmem>>, %arg7: memref<207x49xbf16, #tpu.memory_space<vmem>>, %arg8: memref<16x49x128xbf16, #tpu.memory_space<vmem>>, %arg9: memref<1x128xf32, #tpu.memory_space<vmem>>, %arg10: memref<1x1x128xf32, #tpu.memory_space<vmem>>) attributes {dimension_semantics = [#tpu.dimension_semantics<parallel>], iteration_bounds = array<i64: 2>, scalar_prefetch = 0 : i64, scratch_operands = 0 : i64, tpu.core_type = #tpu.core_type<tc>, window_params = [{transform_indices = @transform_0, window_bounds = array<i64: 1, 1, 930>}, {pipeline_mode = #tpu.pipeline_mode<synchronous>, transform_indices = @transform_1, window_bounds = array<i64: 8, 9>}, {pipeline_mode = #tpu.pipeline_mode<synchronous>, transform_indices = @transform_2, window_bounds = array<i64: 8, 1>}, {pipeline_mode = #tpu.pipeline_mode<synchronous>, transform_indices = @transform_3, window_bounds = array<i64: 809, 272>}, {pipeline_mode = #tpu.pipeline_mode<synchronous>, transform_indices = @transform_4, window_bounds = array<i64: 16, 72>}, {pipeline_mode = #tpu.pipeline_mode<synchronous>, transform_indices = @transform_5, window_bounds = array<i64: 16, 1>}, {pipeline_mode = #tpu.pipeline_mode<synchronous>, transform_indices = @transform_6, window_bounds = array<i64: 207, 49>}, {pipeline_mode = #tpu.pipeline_mode<synchronous>, transform_indices = @transform_7, window_bounds = array<i64: 16, 49, 128>}, {pipeline_mode = #tpu.pipeline_mode<synchronous>, transform_indices = @transform_8, window_bounds = array<i64: 1, 128>}, {transform_indices = @transform_9, window_bounds = array<i64: 1, 1, 128>}]} {
    %c0 = arith.constant 0 : index
    %c0_0 = arith.constant 0 : index
    %c0_1 = arith.constant 0 : index
    %0 = vector.load %arg1[%c0, %c0_0, %c0_1] : memref<1x1x930xf32, #tpu.memory_space<vmem>>, vector<1x1x930xf32>
    %1 = vector.shape_cast %0 : vector<1x1x930xf32> to vector<1x930xf32>
    %2 = vector.extract_strided_slice %1 {offsets = [0, 0], sizes = [1, 840], strides = [1, 1]} : vector<1x930xf32> to vector<1x840xf32>
    %3 = vector.extract_strided_slice %1 {offsets = [0, 1], sizes = [1, 840], strides = [1, 1]} : vector<1x930xf32> to vector<1x840xf32>
    %4 = vector.extract_strided_slice %1 {offsets = [0, 2], sizes = [1, 840], strides = [1, 1]} : vector<1x930xf32> to vector<1x840xf32>
    %5 = vector.extract_strided_slice %1 {offsets = [0, 30], sizes = [1, 840], strides = [1, 1]} : vector<1x930xf32> to vector<1x840xf32>
    %6 = vector.extract_strided_slice %1 {offsets = [0, 31], sizes = [1, 840], strides = [1, 1]} : vector<1x930xf32> to vector<1x840xf32>
    %7 = vector.extract_strided_slice %1 {offsets = [0, 32], sizes = [1, 840], strides = [1, 1]} : vector<1x930xf32> to vector<1x840xf32>
    %8 = vector.extract_strided_slice %1 {offsets = [0, 60], sizes = [1, 840], strides = [1, 1]} : vector<1x930xf32> to vector<1x840xf32>
    %9 = vector.extract_strided_slice %1 {offsets = [0, 61], sizes = [1, 840], strides = [1, 1]} : vector<1x930xf32> to vector<1x840xf32>
    %10 = vector.extract_strided_slice %1 {offsets = [0, 62], sizes = [1, 840], strides = [1, 1]} : vector<1x930xf32> to vector<1x840xf32>
    %11 = tpu.concatenate %2, %3, %4, %5, %6, %7, %8, %9, %10 in 0 : vector<1x840xf32>, vector<1x840xf32>, vector<1x840xf32>, vector<1x840xf32>, vector<1x840xf32>, vector<1x840xf32>, vector<1x840xf32>, vector<1x840xf32>, vector<1x840xf32> -> vector<9x840xf32>
    %12 = arith.truncf %11 : vector<9x840xf32> to vector<9x840xbf16>
    %c0_2 = arith.constant 0 : index
    %c0_3 = arith.constant 0 : index
    %13 = vector.load %arg2[%c0_2, %c0_3] : memref<8x9xbf16, #tpu.memory_space<vmem>>, vector<8x9xbf16>
    %cst = arith.constant dense<0.000000e+00> : vector<8x840xf32>
    %14 = tpu.matmul %13, %12, %cst {dimension_numbers = #tpu.dot_dimension_numbers<[1], [0], [0], [1], [0, 0, 1, 1], [], []>} : vector<8x9xbf16>, vector<9x840xbf16>, vector<8x840xf32> -> vector<8x840xf32>
    %c0_4 = arith.constant 0 : index
    %c0_5 = arith.constant 0 : index
    %15 = vector.load %arg3[%c0_4, %c0_5] : memref<8x1xf32, #tpu.memory_space<vmem>>, vector<8x1xf32>
    %16 = vector.broadcast %15 : vector<8x1xf32> to vector<8x840xf32>
    %17 = arith.addf %14, %16 : vector<8x840xf32>
    %cst_6 = arith.constant 0.000000e+00 : f32
    %18 = vector.broadcast %cst_6 : f32 to vector<8x840xf32>
    %19 = arith.maximumf %17, %18 : vector<8x840xf32>
    %20 = vector.extract_strided_slice %19 {offsets = [0, 0], sizes = [8, 809], strides = [1, 1]} : vector<8x840xf32> to vector<8x809xf32>
    %21 = vector.extract_strided_slice %19 {offsets = [0, 1], sizes = [8, 809], strides = [1, 1]} : vector<8x840xf32> to vector<8x809xf32>
    %22 = arith.maximumf %20, %21 : vector<8x809xf32>
    %23 = vector.extract_strided_slice %19 {offsets = [0, 30], sizes = [8, 809], strides = [1, 1]} : vector<8x840xf32> to vector<8x809xf32>
    %24 = vector.extract_strided_slice %19 {offsets = [0, 31], sizes = [8, 809], strides = [1, 1]} : vector<8x840xf32> to vector<8x809xf32>
    %25 = arith.maximumf %23, %24 : vector<8x809xf32>
    %26 = arith.maximumf %22, %25 : vector<8x809xf32>
    %27 = arith.truncf %26 : vector<8x809xf32> to vector<8x809xbf16>
    %c0_7 = arith.constant 0 : index
    %c0_8 = arith.constant 0 : index
    %28 = vector.load %arg4[%c0_7, %c0_8] : memref<809x272xbf16, #tpu.memory_space<vmem>>, vector<809x272xbf16>
    %cst_9 = arith.constant dense<0.000000e+00> : vector<8x272xf32>
    %29 = tpu.matmul %27, %28, %cst_9 {dimension_numbers = #tpu.dot_dimension_numbers<[1], [0], [0], [1], [0, 0, 1, 1], [], []>} : vector<8x809xbf16>, vector<809x272xbf16>, vector<8x272xf32> -> vector<8x272xf32>
    %30 = vector.extract_strided_slice %29 {offsets = [0, 0], sizes = [8, 224], strides = [1, 1]} : vector<8x272xf32> to vector<8x224xf32>
    %31 = vector.extract_strided_slice %29 {offsets = [0, 1], sizes = [8, 224], strides = [1, 1]} : vector<8x272xf32> to vector<8x224xf32>
    %32 = vector.extract_strided_slice %29 {offsets = [0, 2], sizes = [8, 224], strides = [1, 1]} : vector<8x272xf32> to vector<8x224xf32>
    %33 = vector.extract_strided_slice %29 {offsets = [0, 16], sizes = [8, 224], strides = [1, 1]} : vector<8x272xf32> to vector<8x224xf32>
    %34 = vector.extract_strided_slice %29 {offsets = [0, 17], sizes = [8, 224], strides = [1, 1]} : vector<8x272xf32> to vector<8x224xf32>
    %35 = vector.extract_strided_slice %29 {offsets = [0, 18], sizes = [8, 224], strides = [1, 1]} : vector<8x272xf32> to vector<8x224xf32>
    %36 = vector.extract_strided_slice %29 {offsets = [0, 32], sizes = [8, 224], strides = [1, 1]} : vector<8x272xf32> to vector<8x224xf32>
    %37 = vector.extract_strided_slice %29 {offsets = [0, 33], sizes = [8, 224], strides = [1, 1]} : vector<8x272xf32> to vector<8x224xf32>
    %38 = vector.extract_strided_slice %29 {offsets = [0, 34], sizes = [8, 224], strides = [1, 1]} : vector<8x272xf32> to vector<8x224xf32>
    %39 = tpu.concatenate %30, %31, %32, %33, %34, %35, %36, %37, %38 in 0 : vector<8x224xf32>, vector<8x224xf32>, vector<8x224xf32>, vector<8x224xf32>, vector<8x224xf32>, vector<8x224xf32>, vector<8x224xf32>, vector<8x224xf32>, vector<8x224xf32> -> vector<72x224xf32>
    %40 = arith.truncf %39 : vector<72x224xf32> to vector<72x224xbf16>
    %c0_10 = arith.constant 0 : index
    %c0_11 = arith.constant 0 : index
    %41 = vector.load %arg5[%c0_10, %c0_11] : memref<16x72xbf16, #tpu.memory_space<vmem>>, vector<16x72xbf16>
    %cst_12 = arith.constant dense<0.000000e+00> : vector<16x224xf32>
    %42 = tpu.matmul %41, %40, %cst_12 {dimension_numbers = #tpu.dot_dimension_numbers<[1], [0], [0], [1], [0, 0, 1, 1], [], []>} : vector<16x72xbf16>, vector<72x224xbf16>, vector<16x224xf32> -> vector<16x224xf32>
    %c0_13 = arith.constant 0 : index
    %c0_14 = arith.constant 0 : index
    %43 = vector.load %arg6[%c0_13, %c0_14] : memref<16x1xf32, #tpu.memory_space<vmem>>, vector<16x1xf32>
    %44 = vector.broadcast %43 : vector<16x1xf32> to vector<16x224xf32>
    %45 = arith.addf %42, %44 : vector<16x224xf32>
    %cst_15 = arith.constant 0.000000e+00 : f32
    %46 = vector.broadcast %cst_15 : f32 to vector<16x224xf32>
    %47 = arith.maximumf %45, %46 : vector<16x224xf32>
    %48 = vector.extract_strided_slice %47 {offsets = [0, 0], sizes = [16, 207], strides = [1, 1]} : vector<16x224xf32> to vector<16x207xf32>
    %49 = vector.extract_strided_slice %47 {offsets = [0, 1], sizes = [16, 207], strides = [1, 1]} : vector<16x224xf32> to vector<16x207xf32>
    %50 = arith.maximumf %48, %49 : vector<16x207xf32>
    %51 = vector.extract_strided_slice %47 {offsets = [0, 16], sizes = [16, 207], strides = [1, 1]} : vector<16x224xf32> to vector<16x207xf32>
    %52 = vector.extract_strided_slice %47 {offsets = [0, 17], sizes = [16, 207], strides = [1, 1]} : vector<16x224xf32> to vector<16x207xf32>
    %53 = arith.maximumf %51, %52 : vector<16x207xf32>
    %54 = arith.maximumf %50, %53 : vector<16x207xf32>
    %55 = arith.truncf %54 : vector<16x207xf32> to vector<16x207xbf16>
    %c0_16 = arith.constant 0 : index
    %c0_17 = arith.constant 0 : index
    %56 = vector.load %arg7[%c0_16, %c0_17] : memref<207x49xbf16, #tpu.memory_space<vmem>>, vector<207x49xbf16>
    %cst_18 = arith.constant dense<0.000000e+00> : vector<16x49xf32>
    %57 = tpu.matmul %55, %56, %cst_18 {dimension_numbers = #tpu.dot_dimension_numbers<[1], [0], [0], [1], [0, 0, 1, 1], [], []>} : vector<16x207xbf16>, vector<207x49xbf16>, vector<16x49xf32> -> vector<16x49xf32>
    %58 = arith.truncf %57 : vector<16x49xf32> to vector<16x49xbf16>
    %c0_19 = arith.constant 0 : index
    %c0_20 = arith.constant 0 : index
    %59 = vector.load %arg9[%c0_19, %c0_20] : memref<1x128xf32, #tpu.memory_space<vmem>>, vector<1x128xf32>
    %60 = vector.extract_strided_slice %58 {offsets = [0, 0], sizes = [1, 49], strides = [1, 1]} : vector<16x49xbf16> to vector<1x49xbf16>
    %c0_21 = arith.constant 0 : index
    %c0_22 = arith.constant 0 : index
    %c0_23 = arith.constant 0 : index
    %61 = vector.load %arg8[%c0_21, %c0_22, %c0_23] : memref<16x49x128xbf16, #tpu.memory_space<vmem>>, vector<1x49x128xbf16>
    %62 = vector.shape_cast %61 : vector<1x49x128xbf16> to vector<49x128xbf16>
    %cst_24 = arith.constant dense<0.000000e+00> : vector<1x128xf32>
    %63 = tpu.matmul %60, %62, %cst_24 {dimension_numbers = #tpu.dot_dimension_numbers<[1], [0], [0], [1], [0, 0, 1, 1], [], []>} : vector<1x49xbf16>, vector<49x128xbf16>, vector<1x128xf32> -> vector<1x128xf32>
    %64 = arith.addf %59, %63 : vector<1x128xf32>
    %65 = vector.extract_strided_slice %58 {offsets = [1, 0], sizes = [1, 49], strides = [1, 1]} : vector<16x49xbf16> to vector<1x49xbf16>
    %c1 = arith.constant 1 : index
    %c0_25 = arith.constant 0 : index
    %c0_26 = arith.constant 0 : index
    %66 = vector.load %arg8[%c1, %c0_25, %c0_26] : memref<16x49x128xbf16, #tpu.memory_space<vmem>>, vector<1x49x128xbf16>
    %67 = vector.shape_cast %66 : vector<1x49x128xbf16> to vector<49x128xbf16>
    %cst_27 = arith.constant dense<0.000000e+00> : vector<1x128xf32>
    %68 = tpu.matmul %65, %67, %cst_27 {dimension_numbers = #tpu.dot_dimension_numbers<[1], [0], [0], [1], [0, 0, 1, 1], [], []>} : vector<1x49xbf16>, vector<49x128xbf16>, vector<1x128xf32> -> vector<1x128xf32>
    %69 = arith.addf %64, %68 : vector<1x128xf32>
    %70 = vector.extract_strided_slice %58 {offsets = [2, 0], sizes = [1, 49], strides = [1, 1]} : vector<16x49xbf16> to vector<1x49xbf16>
    %c2 = arith.constant 2 : index
    %c0_28 = arith.constant 0 : index
    %c0_29 = arith.constant 0 : index
    %71 = vector.load %arg8[%c2, %c0_28, %c0_29] : memref<16x49x128xbf16, #tpu.memory_space<vmem>>, vector<1x49x128xbf16>
    %72 = vector.shape_cast %71 : vector<1x49x128xbf16> to vector<49x128xbf16>
    %cst_30 = arith.constant dense<0.000000e+00> : vector<1x128xf32>
    %73 = tpu.matmul %70, %72, %cst_30 {dimension_numbers = #tpu.dot_dimension_numbers<[1], [0], [0], [1], [0, 0, 1, 1], [], []>} : vector<1x49xbf16>, vector<49x128xbf16>, vector<1x128xf32> -> vector<1x128xf32>
    %74 = arith.addf %69, %73 : vector<1x128xf32>
    %75 = vector.extract_strided_slice %58 {offsets = [3, 0], sizes = [1, 49], strides = [1, 1]} : vector<16x49xbf16> to vector<1x49xbf16>
    %c3 = arith.constant 3 : index
    %c0_31 = arith.constant 0 : index
    %c0_32 = arith.constant 0 : index
    %76 = vector.load %arg8[%c3, %c0_31, %c0_32] : memref<16x49x128xbf16, #tpu.memory_space<vmem>>, vector<1x49x128xbf16>
    %77 = vector.shape_cast %76 : vector<1x49x128xbf16> to vector<49x128xbf16>
    %cst_33 = arith.constant dense<0.000000e+00> : vector<1x128xf32>
    %78 = tpu.matmul %75, %77, %cst_33 {dimension_numbers = #tpu.dot_dimension_numbers<[1], [0], [0], [1], [0, 0, 1, 1], [], []>} : vector<1x49xbf16>, vector<49x128xbf16>, vector<1x128xf32> -> vector<1x128xf32>
    %79 = arith.addf %74, %78 : vector<1x128xf32>
    %80 = vector.extract_strided_slice %58 {offsets = [4, 0], sizes = [1, 49], strides = [1, 1]} : vector<16x49xbf16> to vector<1x49xbf16>
    %c4 = arith.constant 4 : index
    %c0_34 = arith.constant 0 : index
    %c0_35 = arith.constant 0 : index
    %81 = vector.load %arg8[%c4, %c0_34, %c0_35] : memref<16x49x128xbf16, #tpu.memory_space<vmem>>, vector<1x49x128xbf16>
    %82 = vector.shape_cast %81 : vector<1x49x128xbf16> to vector<49x128xbf16>
    %cst_36 = arith.constant dense<0.000000e+00> : vector<1x128xf32>
    %83 = tpu.matmul %80, %82, %cst_36 {dimension_numbers = #tpu.dot_dimension_numbers<[1], [0], [0], [1], [0, 0, 1, 1], [], []>} : vector<1x49xbf16>, vector<49x128xbf16>, vector<1x128xf32> -> vector<1x128xf32>
    %84 = arith.addf %79, %83 : vector<1x128xf32>
    %85 = vector.extract_strided_slice %58 {offsets = [5, 0], sizes = [1, 49], strides = [1, 1]} : vector<16x49xbf16> to vector<1x49xbf16>
    %c5 = arith.constant 5 : index
    %c0_37 = arith.constant 0 : index
    %c0_38 = arith.constant 0 : index
    %86 = vector.load %arg8[%c5, %c0_37, %c0_38] : memref<16x49x128xbf16, #tpu.memory_space<vmem>>, vector<1x49x128xbf16>
    %87 = vector.shape_cast %86 : vector<1x49x128xbf16> to vector<49x128xbf16>
    %cst_39 = arith.constant dense<0.000000e+00> : vector<1x128xf32>
    %88 = tpu.matmul %85, %87, %cst_39 {dimension_numbers = #tpu.dot_dimension_numbers<[1], [0], [0], [1], [0, 0, 1, 1], [], []>} : vector<1x49xbf16>, vector<49x128xbf16>, vector<1x128xf32> -> vector<1x128xf32>
    %89 = arith.addf %84, %88 : vector<1x128xf32>
    %90 = vector.extract_strided_slice %58 {offsets = [6, 0], sizes = [1, 49], strides = [1, 1]} : vector<16x49xbf16> to vector<1x49xbf16>
    %c6 = arith.constant 6 : index
    %c0_40 = arith.constant 0 : index
    %c0_41 = arith.constant 0 : index
    %91 = vector.load %arg8[%c6, %c0_40, %c0_41] : memref<16x49x128xbf16, #tpu.memory_space<vmem>>, vector<1x49x128xbf16>
    %92 = vector.shape_cast %91 : vector<1x49x128xbf16> to vector<49x128xbf16>
    %cst_42 = arith.constant dense<0.000000e+00> : vector<1x128xf32>
    %93 = tpu.matmul %90, %92, %cst_42 {dimension_numbers = #tpu.dot_dimension_numbers<[1], [0], [0], [1], [0, 0, 1, 1], [], []>} : vector<1x49xbf16>, vector<49x128xbf16>, vector<1x128xf32> -> vector<1x128xf32>
    %94 = arith.addf %89, %93 : vector<1x128xf32>
    %95 = vector.extract_strided_slice %58 {offsets = [7, 0], sizes = [1, 49], strides = [1, 1]} : vector<16x49xbf16> to vector<1x49xbf16>
    %c7 = arith.constant 7 : index
    %c0_43 = arith.constant 0 : index
    %c0_44 = arith.constant 0 : index
    %96 = vector.load %arg8[%c7, %c0_43, %c0_44] : memref<16x49x128xbf16, #tpu.memory_space<vmem>>, vector<1x49x128xbf16>
    %97 = vector.shape_cast %96 : vector<1x49x128xbf16> to vector<49x128xbf16>
    %cst_45 = arith.constant dense<0.000000e+00> : vector<1x128xf32>
    %98 = tpu.matmul %95, %97, %cst_45 {dimension_numbers = #tpu.dot_dimension_numbers<[1], [0], [0], [1], [0, 0, 1, 1], [], []>} : vector<1x49xbf16>, vector<49x128xbf16>, vector<1x128xf32> -> vector<1x128xf32>
    %99 = arith.addf %94, %98 : vector<1x128xf32>
    %100 = vector.extract_strided_slice %58 {offsets = [8, 0], sizes = [1, 49], strides = [1, 1]} : vector<16x49xbf16> to vector<1x49xbf16>
    %c8 = arith.constant 8 : index
    %c0_46 = arith.constant 0 : index
    %c0_47 = arith.constant 0 : index
    %101 = vector.load %arg8[%c8, %c0_46, %c0_47] : memref<16x49x128xbf16, #tpu.memory_space<vmem>>, vector<1x49x128xbf16>
    %102 = vector.shape_cast %101 : vector<1x49x128xbf16> to vector<49x128xbf16>
    %cst_48 = arith.constant dense<0.000000e+00> : vector<1x128xf32>
    %103 = tpu.matmul %100, %102, %cst_48 {dimension_numbers = #tpu.dot_dimension_numbers<[1], [0], [0], [1], [0, 0, 1, 1], [], []>} : vector<1x49xbf16>, vector<49x128xbf16>, vector<1x128xf32> -> vector<1x128xf32>
    %104 = arith.addf %99, %103 : vector<1x128xf32>
    %105 = vector.extract_strided_slice %58 {offsets = [9, 0], sizes = [1, 49], strides = [1, 1]} : vector<16x49xbf16> to vector<1x49xbf16>
    %c9 = arith.constant 9 : index
    %c0_49 = arith.constant 0 : index
    %c0_50 = arith.constant 0 : index
    %106 = vector.load %arg8[%c9, %c0_49, %c0_50] : memref<16x49x128xbf16, #tpu.memory_space<vmem>>, vector<1x49x128xbf16>
    %107 = vector.shape_cast %106 : vector<1x49x128xbf16> to vector<49x128xbf16>
    %cst_51 = arith.constant dense<0.000000e+00> : vector<1x128xf32>
    %108 = tpu.matmul %105, %107, %cst_51 {dimension_numbers = #tpu.dot_dimension_numbers<[1], [0], [0], [1], [0, 0, 1, 1], [], []>} : vector<1x49xbf16>, vector<49x128xbf16>, vector<1x128xf32> -> vector<1x128xf32>
    %109 = arith.addf %104, %108 : vector<1x128xf32>
    %110 = vector.extract_strided_slice %58 {offsets = [10, 0], sizes = [1, 49], strides = [1, 1]} : vector<16x49xbf16> to vector<1x49xbf16>
    %c10 = arith.constant 10 : index
    %c0_52 = arith.constant 0 : index
    %c0_53 = arith.constant 0 : index
    %111 = vector.load %arg8[%c10, %c0_52, %c0_53] : memref<16x49x128xbf16, #tpu.memory_space<vmem>>, vector<1x49x128xbf16>
    %112 = vector.shape_cast %111 : vector<1x49x128xbf16> to vector<49x128xbf16>
    %cst_54 = arith.constant dense<0.000000e+00> : vector<1x128xf32>
    %113 = tpu.matmul %110, %112, %cst_54 {dimension_numbers = #tpu.dot_dimension_numbers<[1], [0], [0], [1], [0, 0, 1, 1], [], []>} : vector<1x49xbf16>, vector<49x128xbf16>, vector<1x128xf32> -> vector<1x128xf32>
    %114 = arith.addf %109, %113 : vector<1x128xf32>
    %115 = vector.extract_strided_slice %58 {offsets = [11, 0], sizes = [1, 49], strides = [1, 1]} : vector<16x49xbf16> to vector<1x49xbf16>
    %c11 = arith.constant 11 : index
    %c0_55 = arith.constant 0 : index
    %c0_56 = arith.constant 0 : index
    %116 = vector.load %arg8[%c11, %c0_55, %c0_56] : memref<16x49x128xbf16, #tpu.memory_space<vmem>>, vector<1x49x128xbf16>
    %117 = vector.shape_cast %116 : vector<1x49x128xbf16> to vector<49x128xbf16>
    %cst_57 = arith.constant dense<0.000000e+00> : vector<1x128xf32>
    %118 = tpu.matmul %115, %117, %cst_57 {dimension_numbers = #tpu.dot_dimension_numbers<[1], [0], [0], [1], [0, 0, 1, 1], [], []>} : vector<1x49xbf16>, vector<49x128xbf16>, vector<1x128xf32> -> vector<1x128xf32>
    %119 = arith.addf %114, %118 : vector<1x128xf32>
    %120 = vector.extract_strided_slice %58 {offsets = [12, 0], sizes = [1, 49], strides = [1, 1]} : vector<16x49xbf16> to vector<1x49xbf16>
    %c12 = arith.constant 12 : index
    %c0_58 = arith.constant 0 : index
    %c0_59 = arith.constant 0 : index
    %121 = vector.load %arg8[%c12, %c0_58, %c0_59] : memref<16x49x128xbf16, #tpu.memory_space<vmem>>, vector<1x49x128xbf16>
    %122 = vector.shape_cast %121 : vector<1x49x128xbf16> to vector<49x128xbf16>
    %cst_60 = arith.constant dense<0.000000e+00> : vector<1x128xf32>
    %123 = tpu.matmul %120, %122, %cst_60 {dimension_numbers = #tpu.dot_dimension_numbers<[1], [0], [0], [1], [0, 0, 1, 1], [], []>} : vector<1x49xbf16>, vector<49x128xbf16>, vector<1x128xf32> -> vector<1x128xf32>
    %124 = arith.addf %119, %123 : vector<1x128xf32>
    %125 = vector.extract_strided_slice %58 {offsets = [13, 0], sizes = [1, 49], strides = [1, 1]} : vector<16x49xbf16> to vector<1x49xbf16>
    %c13 = arith.constant 13 : index
    %c0_61 = arith.constant 0 : index
    %c0_62 = arith.constant 0 : index
    %126 = vector.load %arg8[%c13, %c0_61, %c0_62] : memref<16x49x128xbf16, #tpu.memory_space<vmem>>, vector<1x49x128xbf16>
    %127 = vector.shape_cast %126 : vector<1x49x128xbf16> to vector<49x128xbf16>
    %cst_63 = arith.constant dense<0.000000e+00> : vector<1x128xf32>
    %128 = tpu.matmul %125, %127, %cst_63 {dimension_numbers = #tpu.dot_dimension_numbers<[1], [0], [0], [1], [0, 0, 1, 1], [], []>} : vector<1x49xbf16>, vector<49x128xbf16>, vector<1x128xf32> -> vector<1x128xf32>
    %129 = arith.addf %124, %128 : vector<1x128xf32>
    %130 = vector.extract_strided_slice %58 {offsets = [14, 0], sizes = [1, 49], strides = [1, 1]} : vector<16x49xbf16> to vector<1x49xbf16>
    %c14 = arith.constant 14 : index
    %c0_64 = arith.constant 0 : index
    %c0_65 = arith.constant 0 : index
    %131 = vector.load %arg8[%c14, %c0_64, %c0_65] : memref<16x49x128xbf16, #tpu.memory_space<vmem>>, vector<1x49x128xbf16>
    %132 = vector.shape_cast %131 : vector<1x49x128xbf16> to vector<49x128xbf16>
    %cst_66 = arith.constant dense<0.000000e+00> : vector<1x128xf32>
    %133 = tpu.matmul %130, %132, %cst_66 {dimension_numbers = #tpu.dot_dimension_numbers<[1], [0], [0], [1], [0, 0, 1, 1], [], []>} : vector<1x49xbf16>, vector<49x128xbf16>, vector<1x128xf32> -> vector<1x128xf32>
    %134 = arith.addf %129, %133 : vector<1x128xf32>
    %135 = vector.extract_strided_slice %58 {offsets = [15, 0], sizes = [1, 49], strides = [1, 1]} : vector<16x49xbf16> to vector<1x49xbf16>
    %c15 = arith.constant 15 : index
    %c0_67 = arith.constant 0 : index
    %c0_68 = arith.constant 0 : index
    %136 = vector.load %arg8[%c15, %c0_67, %c0_68] : memref<16x49x128xbf16, #tpu.memory_space<vmem>>, vector<1x49x128xbf16>
    %137 = vector.shape_cast %136 : vector<1x49x128xbf16> to vector<49x128xbf16>
    %cst_69 = arith.constant dense<0.000000e+00> : vector<1x128xf32>
    %138 = tpu.matmul %135, %137, %cst_69 {dimension_numbers = #tpu.dot_dimension_numbers<[1], [0], [0], [1], [0, 0, 1, 1], [], []>} : vector<1x49xbf16>, vector<49x128xbf16>, vector<1x128xf32> -> vector<1x128xf32>
    %139 = arith.addf %134, %138 : vector<1x128xf32>
    %c0_70 = arith.constant 0 : index
    %c0_71 = arith.constant 0 : index
    %c0_72 = arith.constant 0 : index
    %140 = vector.load %arg10[%c0_70, %c0_71, %c0_72] : memref<1x1x128xf32, #tpu.memory_space<vmem>>, vector<1x1x128xf32>
    %141 = vector.shape_cast %140 : vector<1x1x128xf32> to vector<1x128xf32>
    %142 = vector.shape_cast %139 : vector<1x128xf32> to vector<1x1x128xf32>
    tpu.vector_store %arg10[%c0_70, %c0_71, %c0_72], %142 {strides = array<i32>} : memref<1x1x128xf32, #tpu.memory_space<vmem>>, vector<1x1x128xf32>,
    return
  }
  func.func @transform_0(%arg0: i32) -> (i32, i32, i32) {
    %c0_i32 = arith.constant 0 : i32
    %c0_i32_0 = arith.constant 0 : i32
    %c0_i32_1 = arith.constant 0 : i32
    return %arg0, %c0_i32, %c0_i32_0 : i32, i32, i32
  }
  func.func @transform_1(%arg0: i32) -> (i32, i32) {
    %c0_i32 = arith.constant 0 : i32
    %c0_i32_0 = arith.constant 0 : i32
    %c0_i32_1 = arith.constant 0 : i32
    return %c0_i32, %c0_i32_0 : i32, i32
  }
  func.func @transform_2(%arg0: i32) -> (i32, i32) {
    %c0_i32 = arith.constant 0 : i32
    %c0_i32_0 = arith.constant 0 : i32
    %c0_i32_1 = arith.constant 0 : i32
    return %c0_i32, %c0_i32_0 : i32, i32
  }
  func.func @transform_3(%arg0: i32) -> (i32, i32) {
    %c0_i32 = arith.constant 0 : i32
    %c0_i32_0 = arith.constant 0 : i32
    %c0_i32_1 = arith.constant 0 : i32
    return %c0_i32, %c0_i32_0 : i32, i32
  }
  func.func @transform_4(%arg0: i32) -> (i32, i32) {
    %c0_i32 = arith.constant 0 : i32
    %c0_i32_0 = arith.constant 0 : i32
    %c0_i32_1 = arith.constant 0 : i32
    return %c0_i32, %c0_i32_0 : i32, i32
  }
  func.func @transform_5(%arg0: i32) -> (i32, i32) {
    %c0_i32 = arith.constant 0 : i32
    %c0_i32_0 = arith.constant 0 : i32
    %c0_i32_1 = arith.constant 0 : i32
    return %c0_i32, %c0_i32_0 : i32, i32
  }
  func.func @transform_6(%arg0: i32) -> (i32, i32) {
    %c0_i32 = arith.constant 0 : i32
    %c0_i32_0 = arith.constant 0 : i32
    %c0_i32_1 = arith.constant 0 : i32
    return %c0_i32, %c0_i32_0 : i32, i32
  }
  func.func @transform_7(%arg0: i32) -> (i32, i32, i32) {
    %c0_i32 = arith.constant 0 : i32
    %c0_i32_0 = arith.constant 0 : i32
    %c0_i32_1 = arith.constant 0 : i32
    %c0_i32_2 = arith.constant 0 : i32
    return %c0_i32, %c0_i32_0, %c0_i32_1 : i32, i32, i32
  }
  func.func @transform_8(%arg0: i32) -> (i32, i32) {
    %c0_i32 = arith.constant 0 : i32
    %c0_i32_0 = arith.constant 0 : i32
    %c0_i32_1 = arith.constant 0 : i32
    return %c0_i32, %c0_i32_0 : i32, i32
  }
  func.func @transform_9(%arg0: i32) -> (i32, i32, i32) {
    %c0_i32 = arith.constant 0 : i32
    %c0_i32_0 = arith.constant 0 : i32
    %c0_i32_1 = arith.constant 0 : i32
    return %arg0, %c0_i32, %c0_i32_0 : i32, i32, i32
  }
}

</mosaic_0001>

<bundles_post_ra>
// kernel: cnn_forward.1
= control target key start
LH: loop header
LB: loop body
LE: loop exit
PB: predicated region body
PF: predicated region fallthrough
CT: control target
= control target key end

     0   :  { %14 = vsyncpa [#allocation3], 0  ;;  %s6896_s0 = inlined_call_operand.vmem [shape: f32[2,1,930], index: 0, kind: input, shape index: {}]   ;;  %s6897_s1 = inlined_call_operand.vmem [shape: bf16[8,9], index: 1, kind: input, shape index: {}]   ;;  %s6898_s2 = inlined_call_operand.vmem [shape: f32[8,1], index: 2, kind: input, shape index: {}]   ;;  %s6899_s3 = inlined_call_operand.vmem [shape: bf16[809,272], index: 3, kind: input, shape index: {}]   ;;  %s6900_s4 = inlined_call_operand.vmem [shape: bf16[16,72], index: 4, kind: input, shape index: {}]   ;;  %s6901_s5 = inlined_call_operand.vmem [shape: f32[16,1], index: 5, kind: input, shape index: {}]   ;;  %s6902_s6 = inlined_call_operand.vmem [shape: bf16[207,49], index: 6, kind: input, shape index: {}]   ;;  %s6903_s7 = inlined_call_operand.vmem [shape: bf16[16,49,128], index: 7, kind: input, shape index: {}]   ;;  %s6904_s8 = inlined_call_operand.vmem [shape: f32[1,128], index: 8, kind: input, shape index: {}]   ;;  %s6905_s9 = inlined_call_operand.hbm [shape: f32[2,1,128], index: 9, kind: output, shape index: {}]  }
   0x1   :  { %16 = vsyncpa [#allocation3 + $0x1], 0  ;;  %s5458_s30 = smov 0   ;;  %s5460_s10 = smov 0  }
   0x2   :  { %s5462_s11 = smov 0   ;;  %s5464_s12 = smov 0  }
   0x3 LB: > { %s5479_s13 = sadd.s32 4294967295, %s5388_s12   ;;  %s3974_s14 = sadd.s32 4294967294, %s5388_s12   ;;  %s5388_s12 = sphi %s5464_s12, %s6915_s12   ;;  %s5384_s11 = sphi %s5462_s11, %s6914_s11   ;;  %s5380_s10 = sphi %s5460_s10, %s6913_s10   ;;  %s5376_s30 = sphi %s5458_s30, %s6912_s30  }
   0x4   : > { %s5483_s15 = sadd.s32 1, %s5388_s12   ;;  %s223_s16 = sadd.s32 1, %s5384_s11 }
   0x5   : > { %s220_s17 = ssub.s32 %s5388_s12, %s5483_s15  ;;  %p233_p0 = scmp.ne.s32.totalorder %s5384_s11, %s5380_s10 }
   0x6   : > { %p221_p1 = scmp.eq.s32.totalorder %s220_s17, 0  ;;  %p234_p2 = scmp.eq.s32.totalorder %s5479_s13, 1 }
   0x7   : > { %p239_p3 = scmp.ne.s32.totalorder %s5380_s10, %s5376_s30  ;;  %p240_p4 = scmp.eq.s32.totalorder %s3974_s14, 1 }
   0x8   : > { %s5494_s18 = scalar_select %p221_p1, %s5384_s11, %s223_s16  }
   0x9   : > { %p5496_p5 = por %p234_p2, %p233_p0  ;;  %p5500_p6 = por %p240_p4, %p239_p3 }
   0xa   : > { %p3977_p7 = scmp.ge.s32.totalorder %s5388_s12, 1  ;;  %p289_p8 = scmp.lt.s32.totalorder %s5388_s12, 3 }
   0xc   : > { %p290_p9 = pnand %p3977_p7, %p289_p8 }
   0xd   : > { %p323_p10 = scmp.lt.s32.totalorder (!%p290_p9), %s5479_s13, 1  ;;  %v330_v0 = vlaneseq (!%p290_p9)  ;;  %s5390_s26 = smov (!%p290_p9), 127   ;;  %v5398_v21 = vmov (!%p290_p9), 0   ;;  %v666_v23 = vld [vmem:[%s6898_s2] sm:$0xff] (!%p290_p9)  ;;  %vm379_vm0 = vcmask (!%p290_p9), 1039360   ;;  %vm602_vm1 = vcmask (!%p290_p9), 1040384  }
   0xe   : > { %293 = sbr.rel (%p290_p9) target bundleno = 2430 (0x97e), region = 56  ;;  %s6907_s27 = smov (!%p290_p9), 126   ;;  %731 = vmatprep.mubr.bf16.mxu0 (!%p290_p9), %v5398_v21  ;;  %772 = vmatprep.mubr.bf16.mxu1 (!%p290_p9), %v5398_v21  ;;  %vm407_vm2 = vcmask (!%p290_p9), 1031168   ;;  %vm610_vm3 = vcmask (!%p290_p9), 1041408   ;;  %vm435_vm4 = vcmask (!%p290_p9), 801792   ;;  %vm618_vm5 = vcmask (!%p290_p9), 1042432  }
   0xf   : > { %v331_v1 = vshrl.u32 (!%p290_p9), %v330_v0, 7  ;;  %s5392_s28 = smov (!%p290_p9), 98   ;;  %s5393_s29 = smov (!%p290_p9), 97   ;;  %4952 = vset.pattern.permute.xlu1 (!%p290_p9), %v5398_v21  ;;  %5023 = vset.pattern.permute.xlu0 (!%p290_p9), %v5398_v21  ;;  %vm463_vm6 = vcmask (!%p290_p9), 793600   ;;  %vm626_vm7 = vcmask (!%p290_p9), 1043456   ;;  %vm491_vm8 = vcmask (!%p290_p9), 785408  }
  0x10   : > { %s6906_s14 = smov (!%p290_p9), 96   ;;  %s5395_s16 = smov (!%p290_p9), 68   ;;  %vm525_vm9 = vcmask (!%p290_p9), 556032   ;;  %vm634_vm10 = vcmask (!%p290_p9), 1044480   ;;  %vm642_vm11 = vcmask (!%p290_p9), 1045504   ;;  %vm556_vm12 = vcmask (!%p290_p9), 547840  }
  0x11   : > { %v332_v2 = vsub.s32 (!%p290_p9), 0, %v331_v1  ;;  %v336_v3 = vsub.s32 (!%p290_p9), 1, %v331_v1  ;;  %v340_v4 = vsub.s32 (!%p290_p9), 2, %v331_v1  ;;  %v344_v5 = vsub.s32 (!%p290_p9), 3, %v331_v1  ;;  %s5396_s17 = smov (!%p290_p9), 67   ;;  %s5402_s24 = smov (!%p290_p9), 95  }
  0x12   : > { %v348_v6 = vsub.s32 (!%p290_p9), 4, %v331_v1  ;;  %v507_v7 = vsub.s32 (!%p290_p9), 7, %v331_v1  ;;  %v352_v17 = vsub.s32 (!%p290_p9), 5, %v331_v1  ;;  %v356_v18 = vsub.s32 (!%p290_p9), 6, %v331_v1 }
  0x13   : > { %vm587_vm13 = vcmask (!%p290_p9), 539648   ;;  %vm650_vm14 = vcmask (!%p290_p9), 1046528   ;;  %vm672_vm15 = vcmask (!%p290_p9), 72704  }
  0x15   : > { %s324_s21 = scalar_select %p323_p10, %s5479_s13, 1 }
  0x17   : > { %s3978_s22 = sshll.u32 %s324_s21, 3  ;;  %s5397_s21 = smov 66  }
  0x18   : > { %s326_s25 = scalar_lea.vmem %s6896_s0, %s3978_s22 }
  0x19   : > { %v328_v8 = vld [vmem:[%s326_s25] sm:$0xff]  ;;  %s6910_s25 = smov 126  }
  0x1a   : > { %v5511_v9 = vrot.slane %v328_v8, %v332_v2  ;;  %v5513_v10 = vrot.slane %v328_v8, %v336_v3  ;;  %v5515_v11 = vrot.slane %v328_v8, %v340_v4  ;;  %v5517_v12 = vrot.slane %v328_v8, %v344_v5 }
  0x1b   : > { %v5519_v13 = vrot.slane %v328_v8, %v348_v6  ;;  %v508_v14 = vrot.slane %v328_v8, %v507_v7  ;;  %v5549_v19 = vrot.slane %v328_v8, %v352_v17  ;;  %v5551_v20 = vrot.slane %v328_v8, %v356_v18 }
  0x1c   : > { %365 = vrot.lane.b32.xlu1 %v5511_v9, %s5390_s26  ;;  %v4832_v15 = vpack.i.bf16 %v5515_v11, %v5513_v10 }
  0x1d   : > { %v4837_v16 = vpack.i.bf16 %v5519_v13, %v5517_v12  ;;  %v4917_v22 = vpack.i.bf16 %v5551_v20, %v5549_v19 }
  0x1e   : > { %4833 = vrot.lane.b32.xlu0 %v4832_v15, %s5390_s26 }
  0x20   : > { %4843 = vrot.lane.b32.xlu1 %v4832_v15, %s6907_s27 }
  0x22   : > { %4838 = vrot.lane.b32.xlu0 %v4837_v16, %s5390_s26 }
  0x24   : > { %393 = vrot.lane.b32.xlu1 %v5511_v9, %s6907_s27 }
  0x26   : > { %4848 = vrot.lane.b32.xlu0 %v4837_v16, %s6907_s27 }
  0x28   : > { %4858 = vrot.lane.b32.xlu1 %v4837_v16, %s5392_s28 }
  0x2a   : > { %4853 = vrot.lane.b32.xlu0 %v4832_v15, %s5392_s28 }
  0x2c   : > { %4863 = vrot.lane.b32.xlu1 %v4832_v15, %s5393_s29 }
  0x2e   : > { %421 = vrot.lane.b32.xlu0 %v5511_v9, %s5392_s28 }
  0x30   : > { %449 = vrot.lane.b32.xlu1 %v5511_v9, %s5393_s29 }
  0x32   : > { %4868 = vrot.lane.b32.xlu0 %v4837_v16, %s5393_s29 }
  0x34   : > { %4878 = vrot.lane.b32.xlu1 %v4837_v16, %s6906_s14 }
  0x36   : > { %4873 = vrot.lane.b32.xlu0 %v4832_v15, %s6906_s14 }
  0x38   : > { %4883 = vrot.lane.b32.xlu1 %v4832_v15, %s5395_s16 }
  0x3a   : > { %477 = vrot.lane.b32.xlu0 %v5511_v9, %s6906_s14 }
  0x3c   : > { %509 = vrot.lane.b32.xlu1 %v5511_v9, %s5395_s16 }
  0x3e   : > { %4888 = vrot.lane.b32.xlu0 %v4837_v16, %s5395_s16 }
  0x40   : > { %4898 = vrot.lane.b32.xlu1 %v4837_v16, %s5396_s17 }
  0x42   : > { %4893 = vrot.lane.b32.xlu0 %v4832_v15, %s5396_s17 }
  0x44   : > { %4903 = vrot.lane.b32.xlu1 %v4832_v15, %s5397_s21 }
  0x46   : > { %540 = vrot.lane.b32.xlu0 %v5511_v9, %s5396_s17 }
  0x48   : > { %571 = vrot.lane.b32.xlu1 %v5511_v9, %s5397_s21 }
  0x4a   : > { %4908 = vrot.lane.b32.xlu0 %v4837_v16, %s5397_s21 }
  0x4c   : > { %4918 = vrot.lane.b32.xlu1 %v4917_v22, %s6907_s27  ;;  %s5406_s27 = smov 94  }
  0x4e   : > { %4913 = vrot.lane.b32.xlu0 %v4917_v22, %s5390_s26 }
  0x50   : > { %4928 = vrot.lane.b32.xlu1 %v4917_v22, %s5393_s29  ;;  %s5403_s29 = smov 112  }
  0x52   : > { %4923 = vrot.lane.b32.xlu0 %v4917_v22, %s5392_s28 }
  0x54   : > { %4938 = vrot.lane.b32.xlu1 %v4917_v22, %s5395_s16 }
  0x56   : > { %4933 = vrot.lane.b32.xlu0 %v4917_v22, %s6906_s14 }
  0x58   : > { %4948 = vrot.lane.b32.xlu1 %v4917_v22, %s5397_s21 }
  0x5a   : > { %4943 = vrot.lane.b32.xlu0 %v4917_v22, %s5396_s17 }
  0x5c   : > { %554 = vrot.lane.b32.xlu1 %v508_v14, %s5396_s17  ;;  %s5405_s17 = smov 110  }
  0x5e   : > { %523 = vrot.lane.b32.xlu0 %v508_v14, %s5395_s16  ;;  %s5404_s16 = smov 111  }
  0x60   : > { %669 = vperm.xlu1 %4952, %v666_v23  }
  0x62   : > { %585 = vrot.lane.b32.xlu0 %v508_v14, %s5397_s21  ;;  %s6911_s21 = smov 96  }
  0x8e   : > { %v366_v24 = vpop.permute.xlu1 %365 }
  0x90   : > { %v4834_v25 = vpop.permute.xlu0 %4833 }
  0x91   : > { %v4836_v34 = vunpack.i.h.bf16 %v4834_v25  ;;  %v4835_v35 = vunpack.i.l.bf16 %v4834_v25 }
  0x92   : > { %v4844_v26 = vpop.permute.xlu1 %4843 }
  0x93   : > { %v4846_v37 = vunpack.i.h.bf16 %v4844_v26  ;;  %v4845_v38 = vunpack.i.l.bf16 %v4844_v26  ;;  %v381_v40 = vsel %vm379_vm0, %v4835_v35, %v4836_v34  ;;  %v380_v44 = vsel %vm379_vm0, %v366_v24, %v4835_v35 }
  0x94   : > { %v5571_v27 = vpop.permute.xlu0 %4838  ;;  %v604_v45 = vsel %vm602_vm1, %v5513_v10, %v381_v40  ;;  %v603_v54 = vsel %vm602_vm1, %v5511_v9, %v380_v44  ;;  %v5399_v35 = vmov 65535  }
  0x95   : > { %v4841_v41 = vunpack.i.h.bf16 %v5571_v27  ;;  %v4840_v42 = vunpack.i.l.bf16 %v5571_v27  ;;  %v409_v46 = vsel %vm407_vm2, %v4845_v38, %v4846_v37 }
  0x96   : > { %v394_v28 = vpop.permute.xlu1 %393  ;;  %v612_v56 = vsel %vm610_vm3, %v604_v45, %v409_v46 }
  0x97   : > { %v382_v52 = vsel %vm379_vm0, %v4836_v34, %v4840_v42  ;;  %v383_v53 = vsel %vm379_vm0, %v4840_v42, %v4841_v41  ;;  %v408_v3 = vsel %vm407_vm2, %v394_v28, %v4845_v38 }
  0x98   : > { %v5573_v29 = vpop.permute.xlu0 %4848  ;;  %v605_v1 = vsel %vm602_vm1, %v5515_v11, %v382_v52  ;;  %v606_v2 = vsel %vm602_vm1, %v5517_v12, %v383_v53  ;;  %v611_v15 = vsel %vm610_vm3, %v603_v54, %v408_v3 }
  0x99   : > { %v4851_v50 = vunpack.i.h.bf16 %v5573_v29  ;;  %v4850_v51 = vunpack.i.l.bf16 %v5573_v29 }
  0x9a   : > { %v5575_v30 = vpop.permute.xlu1 %4858 }
  0x9b   : > { %v4861_v57 = vunpack.i.h.bf16 %v5575_v30  ;;  %v4860_v60 = vunpack.i.l.bf16 %v5575_v30  ;;  %v411_v4 = vsel %vm407_vm2, %v4850_v51, %v4851_v50  ;;  %v410_v5 = vsel %vm407_vm2, %v4846_v37, %v4850_v51 }
  0x9c   : > { %v5577_v31 = vpop.permute.xlu0 %4853  ;;  %v614_v16 = vsel %vm610_vm3, %v606_v2, %v411_v4  ;;  %v613_v28 = vsel %vm610_vm3, %v605_v1, %v410_v5  ;;  %v676_v37 = vsel %vm626_vm7, 4294967295, %v5399_v35 }
  0x9d   : > { %v4856_v47 = vunpack.i.h.bf16 %v5577_v31  ;;  %v4855_v48 = vunpack.i.l.bf16 %v5577_v31  ;;  %v439_v17 = vsel %vm435_vm4, %v4860_v60, %v4861_v57 }
  0x9e   : > { %v5579_v32 = vpop.permute.xlu1 %4863 }
  0x9f   : > { %v4866_v58 = vunpack.i.h.bf16 %v5579_v32  ;;  %v4865_v59 = vunpack.i.l.bf16 %v5579_v32  ;;  %v437_v61 = vsel %vm435_vm4, %v4855_v48, %v4856_v47  ;;  %v438_v44 = vsel %vm435_vm4, %v4856_v47, %v4860_v60 }
  0xa0   : > { %v422_v33 = vpop.permute.xlu0 %421  ;;  %v620_v10 = vsel %vm618_vm5, %v612_v56, %v437_v61  ;;  %v621_v3 = vsel %vm618_vm5, %v613_v28, %v438_v44 }
  0xa1   : > { %v436_v6 = vsel %vm435_vm4, %v422_v33, %v4855_v48  ;;  %v465_v11 = vsel %vm463_vm6, %v4865_v59, %v4866_v58 }
  0xa2   : > { %v5581_v36 = vpop.permute.xlu1 %449  ;;  %v619_v23 = vsel %vm618_vm5, %v611_v15, %v436_v6  ;;  %v628_v31 = vsel %vm626_vm7, %v620_v10, %v465_v11 }
  0xa3   : > { %v464_v24 = vsel %vm463_vm6, %v5581_v36, %v4865_v59  ;;  %v622_v36 = vsel %vm618_vm5, %v614_v16, %v439_v17 }
  0xa4   : > { %v5583_v39 = vpop.permute.xlu0 %4868  ;;  %v627_v45 = vsel %vm626_vm7, %v619_v23, %v464_v24 }
  0xa5   : > { %v4871_v7 = vunpack.i.h.bf16 %v5583_v39  ;;  %v4870_v8 = vunpack.i.l.bf16 %v5583_v39 }
  0xa6   : > { %v5588_v43 = vpop.permute.xlu1 %4878 }
  0xa7   : > { %v4881_v25 = vunpack.i.h.bf16 %v5588_v43  ;;  %v4880_v26 = vunpack.i.l.bf16 %v5588_v43  ;;  %v467_v33 = vsel %vm463_vm6, %v4870_v8, %v4871_v7  ;;  %v466_v10 = vsel %vm463_vm6, %v4866_v58, %v4870_v8 }
  0xa8   : > { %v5596_v49 = vpop.permute.xlu0 %4873  ;;  %v630_v52 = vsel %vm626_vm7, %v622_v36, %v467_v33 }
  0xa9   : > { %v4876_v62 = vunpack.i.h.bf16 %v5596_v49  ;;  %v4875_v63 = vunpack.i.l.bf16 %v5596_v49  ;;  %v495_v53 = vsel %vm491_vm8, %v4880_v26, %v4881_v25  ;;  %v629_v49 = vsel %vm626_vm7, %v621_v3, %v466_v10 }
  0xaa   : > { %v5606_v55 = vpop.permute.xlu1 %4883  ;;  %v638_v24 = vsel %vm634_vm10, %v630_v52, %v495_v53 }
  0xab   : > { %v4886_v12 = vunpack.i.h.bf16 %v5606_v55  ;;  %v4885_v14 = vunpack.i.l.bf16 %v5606_v55  ;;  %v493_v18 = vsel %vm491_vm8, %v4875_v63, %v4876_v62  ;;  %v494_v16 = vsel %vm491_vm8, %v4876_v62, %v4880_v26 }
  0xac   : > { %v478_v0 = vpop.permute.xlu0 %477  ;;  %v636_v42 = vsel %vm634_vm10, %v628_v31, %v493_v18 }
  0xad   : > { %v527_v38 = vsel %vm525_vm9, %v4885_v14, %v4886_v12  ;;  %v492_v40 = vsel %vm491_vm8, %v478_v0, %v4875_v63 }
  0xae   : > { %v510_v9 = vpop.permute.xlu1 %509  ;;  %v635_v56 = vsel %vm634_vm10, %v627_v45, %v492_v40  ;;  %v644_v61 = vsel %vm642_vm11, %v636_v42, %v527_v38 }
  0xaf   : > { %v526_v59 = vsel %vm525_vm9, %v510_v9, %v4885_v14  ;;  %v5682_v9 = vsel %vm634_vm10, %v676_v37, 0  ;;  %v637_v37 = vsel %vm634_vm10, %v629_v49, %v494_v16 }
  0xb0   : > { %v5642_v22 = vpop.permute.xlu0 %4888  ;;  %v643_v11 = vsel %vm642_vm11, %v635_v56, %v526_v59  ;;  %v5720_v56 = vld [vmem:[%s6897_s1] sm:$0xf] }
  0xb1   : > { %v4891_v46 = vunpack.i.h.bf16 %v5642_v22  ;;  %v4890_v48 = vunpack.i.l.bf16 %v5642_v22 }
  0xb2   : > { %v5654_v34 = vpop.permute.xlu1 %4898 }
  0xb3   : > { %v4901_v47 = vunpack.i.h.bf16 %v5654_v34  ;;  %v4900_v63 = vunpack.i.l.bf16 %v5654_v34  ;;  %v529_v4 = vsel %vm525_vm9, %v4890_v48, %v4891_v46  ;;  %v528_v32 = vsel %vm525_vm9, %v4886_v12, %v4890_v48 }
  0xb4   : > { %v4894_v51 = vpop.permute.xlu0 %4893  ;;  %v646_v28 = vsel %vm642_vm11, %v638_v24, %v529_v4  ;;  %v645_v44 = vsel %vm642_vm11, %v637_v37, %v528_v32 }
  0xb5   : > { %v4896_v54 = vunpack.i.h.bf16 %v4894_v51  ;;  %v4895_v55 = vunpack.i.l.bf16 %v4894_v51  ;;  %v560_v8 = vsel %vm556_vm12, %v4900_v63, %v4901_v47 }
  0xb6   : > { %v4904_v60 = vpop.permute.xlu1 %4903  ;;  %v654_v42 = vsel %vm650_vm14, %v646_v28, %v560_v8 }
  0xb7   : > { %v4906_v0 = vunpack.i.h.bf16 %v4904_v60  ;;  %v4905_v1 = vunpack.i.l.bf16 %v4904_v60  ;;  %v558_v2 = vsel %vm556_vm12, %v4895_v55, %v4896_v54  ;;  %v559_v62 = vsel %vm556_vm12, %v4896_v54, %v4900_v63 }
  0xb8   : > { %v541_v5 = vpop.permute.xlu0 %540  ;;  %v652_v6 = vsel %vm650_vm14, %v644_v61, %v558_v2  ;;  %v653_v52 = vsel %vm650_vm14, %v645_v44, %v559_v62 }
  0xb9   : > { %v557_v14 = vsel %vm556_vm12, %v541_v5, %v4895_v55  ;;  %v589_v15 = vsel %vm587_vm13, %v4905_v1, %v4906_v0 }
  0xba   : > { %v572_v17 = vpop.permute.xlu1 %571  ;;  %v651_v18 = vsel %vm650_vm14, %v643_v11, %v557_v14  ;;  %v659_v23 = vpack.c.bf16 %v589_v15, %v652_v6 }
  0xbb   : > { %v588_v58 = vsel %vm587_vm13, %v572_v17, %v4905_v1 }
  0xbc   : > { %v658_v26 = vpack.c.bf16 %v588_v58, %v651_v18  ;;  %v5703_v31 = vpop.permute.xlu0 %4908  ;;  %v682_v33 = vand.u32 %v5682_v9, %v659_v23 }
  0xbd   : > { %v4911_v12 = vunpack.i.h.bf16 %v5703_v31  ;;  %v4910_v36 = vunpack.i.l.bf16 %v5703_v31 }
  0xbe   : > { %v4919_v38 = vpop.permute.xlu1 %4918  ;;  %699 = vmatprep.subr.bf16.mxu0 %v682_v33  ;;  %v679_v40 = vand.u32 %v5682_v9, %v658_v26 }
  0xbf   : > { %v4921_v45 = vunpack.i.h.bf16 %v4919_v38  ;;  %v591_v48 = vsel %vm587_vm13, %v4910_v36, %v4911_v12  ;;  %v590_v51 = vsel %vm587_vm13, %v4906_v0, %v4910_v36  ;;  %v4920_v53 = vunpack.i.l.bf16 %v4919_v38 }
  0xc0   : > { %v4914_v54 = vpop.permute.xlu0 %4913  ;;  %700 = vmatpush1.bf16.msra.mxu0 %v679_v40  ;;  %v661_v55 = vpack.c.bf16 %v591_v48, %v654_v42  ;;  %v660_v59 = vpack.c.bf16 %v590_v51, %v653_v52 }
  0xc1   : > { %v4916_v60 = vunpack.i.h.bf16 %v4914_v54  ;;  %v4915_v61 = vunpack.i.l.bf16 %v4914_v54  ;;  %v413_v63 = vsel %vm407_vm2, %v4920_v53, %v4921_v45  ;;  %v412_v17 = vsel %vm407_vm2, %v4851_v50, %v4920_v53 }
  0xc2   : > { %v4929_v1 = vpop.permute.xlu1 %4928  ;;  %v688_v0 = vand.u32 %v5682_v9, %v661_v55  ;;  %v685_v2 = vand.u32 %v5682_v9, %v660_v59 }
  0xc3   : > { %v609_v3 = vsel %vm602_vm1, %v5551_v20, %v4916_v60  ;;  %v384_v4 = vsel %vm379_vm0, %v4841_v41, %v4915_v61  ;;  %v385_v5 = vsel %vm379_vm0, %v4915_v61, %v4916_v60  ;;  %v4931_v6 = vunpack.i.h.bf16 %v4929_v1  ;;  %3979 = vmatmul.mubr.msk.bf16.vlgmr.msra.gmra.mrb[0].mxu0 %vm672_vm15, %v5720_v56 }
  0xc4   : > { %v607_v10 = vsel %vm602_vm1, %v5519_v13, %v384_v4  ;;  %v608_v11 = vsel %vm602_vm1, %v5549_v19, %v385_v5  ;;  %v4930_v14 = vunpack.i.l.bf16 %v4929_v1  ;;  %v4924_v15 = vpop.permute.xlu0 %4923  ;;  %740 = vmatprep.subr.bf16.mxu1 %v688_v0  ;;  %813 = vmatprep.mubr.bf16.mxu0 %v5398_v21  ;;  %v617_v16 = vsel %vm610_vm3, %v609_v3, %v4921_v45 }
  0xc5   : > { %v4926_v20 = vunpack.i.h.bf16 %v4924_v15  ;;  %v4925_v27 = vunpack.i.l.bf16 %v4924_v15  ;;  %v616_v41 = vsel %vm610_vm3, %v608_v11, %v413_v63  ;;  %741 = vmatpush1.bf16.msra.mxu1 %v685_v2  ;;  %v5400_v19 = vmov 0.0  }
  0xc6   : > { %v469_v13 = vsel %vm463_vm6, %v4930_v14, %v4931_v6  ;;  %v4939_v18 = vpop.permute.xlu1 %4938  ;;  %4495 = vmatprep.subr.bf16.mxu1 %v5400_v19  ;;  %v615_v32 = vsel %vm610_vm3, %v607_v10, %v412_v17  ;;  %v468_v29 = vsel %vm463_vm6, %v4871_v7, %v4930_v14  ;;  %vm5401_vm3 = vmmov 0  }
  0xc7   : > { %v440_v23 = vsel %vm435_vm4, %v4861_v57, %v4925_v27  ;;  %v441_v24 = vsel %vm435_vm4, %v4925_v27, %v4926_v20  ;;  %v4941_v58 = vunpack.i.h.bf16 %v4939_v18  ;;  %v625_v28 = vsel %vm618_vm5, %v617_v16, %v4926_v20 }
  0xc8   : > { %v623_v50 = vsel %vm618_vm5, %v615_v32, %v440_v23  ;;  %v624_v8 = vsel %vm618_vm5, %v616_v41, %v441_v24  ;;  %v4934_v49 = vpop.permute.xlu0 %4933  ;;  %3980 = vmatmul.mubr.msk.bf16.vlgmr.msra.gmra.mrb[0].mxu1 %vm672_vm15, %v5720_v56  ;;  %v4940_v30 = vunpack.i.l.bf16 %v4939_v18  ;;  %v633_v48 = vsel %vm626_vm7, %v625_v28, %v4931_v6 }
  0xc9   : > { %v4936_v57 = vunpack.i.h.bf16 %v4934_v49  ;;  %v4935_v62 = vunpack.i.l.bf16 %v4934_v49  ;;  %v632_v26 = vsel %vm626_vm7, %v624_v8, %v469_v13  ;;  %4497 = vmatprep.mubr.msk.bf16.mxu1 %vm5401_vm3, %v5400_v19  ;;  %v631_v39 = vsel %vm626_vm7, %v623_v50, %v468_v29 }
  0xca   : > { %v4949_v7 = vpop.permute.xlu1 %4948  ;;  %v531_v33 = vsel %vm525_vm9, %v4940_v30, %v4941_v58  ;;  %v530_v53 = vsel %vm525_vm9, %v4891_v46, %v4940_v30  ;;  %v5044_v30 = vld [vmem:[%s6899_s3] ss:$12 sps:$4 sm:$0xff]   ;;  %vm2332_vm5 = vcmask 916480   ;;  %vm2340_vm6 = vcmask 908288  }
  0xcb   : > { %v496_v37 = vsel %vm491_vm8, %v4881_v25, %v4935_v62  ;;  %v497_v36 = vsel %vm491_vm8, %v4935_v62, %v4936_v57  ;;  %v4951_v38 = vunpack.i.h.bf16 %v4949_v7  ;;  %v4950_v44 = vunpack.i.l.bf16 %v4949_v7  ;;  %v5049_v62 = vld [vmem:[%s6899_s3 + $0x1c] ss:$12 sps:$4 sm:$0xff]  }
  0xcc   : > { %v639_v40 = vsel %vm634_vm10, %v631_v39, %v496_v37  ;;  %v640_v42 = vsel %vm634_vm10, %v632_v26, %v497_v36  ;;  %v4944_v45 = vpop.permute.xlu0 %4943  ;;  %v641_v61 = vsel %vm634_vm10, %v633_v48, %v4936_v57  ;;  %v5046_v57 = vld [vmem:[%s6899_s3 + $0x4] ss:$12 sps:$4 sm:$0xff]   ;;  %v5052_v39 = vld [vmem:[%s6899_s3 + $0x34] ss:$12 sps:$4 sm:$0xff]   ;;  %v5055_v36 = vld [vmem:[%s6899_s3 + $0x4c] ss:$12 sps:$4 sm:$0xff]  }
  0xcd   : > { %v4946_v51 = vunpack.i.h.bf16 %v4944_v45  ;;  %v4945_v52 = vunpack.i.l.bf16 %v4944_v45  ;;  %v593_v43 = vsel %vm587_vm13, %v4950_v44, %v4951_v38  ;;  %v648_v54 = vsel %vm642_vm11, %v640_v42, %v531_v33  ;;  %v5047_v26 = vld [vmem:[%s6899_s3 + $0x18] ss:$12 sps:$4 sm:$0xff]   ;;  %v5050_v33 = vld [vmem:[%s6899_s3 + $0x30] ss:$12 sps:$4 sm:$0xff]  }
  0xce   : > { %v555_v25 = vpop.permute.xlu1 %554  ;;  %v647_v60 = vsel %vm642_vm11, %v639_v40, %v530_v53  ;;  %v592_v22 = vsel %vm587_vm13, %v4911_v12, %v4950_v44  ;;  %v5053_v44 = vld [vmem:[%s6899_s3 + $0x48] ss:$12 sps:$4 sm:$0xff]   ;;  %v5058_v48 = vld [vmem:[%s6899_s3 + $0x64] ss:$12 sps:$4 sm:$0xff]   ;;  %v5056_v53 = vld [vmem:[%s6899_s3 + $0x60] ss:$12 sps:$4 sm:$0xff]  }
  0xcf   : > { %v561_v55 = vsel %vm556_vm12, %v4901_v47, %v4945_v52  ;;  %v562_v59 = vsel %vm556_vm12, %v4945_v52, %v4946_v51  ;;  %v563_v1 = vsel %vm556_vm12, %v4946_v51, %v555_v25  ;;  %v5059_v25 = vld [vmem:[%s6899_s3 + $0x78] ss:$12 sps:$4 sm:$0xff]   ;;  %vm2377_vm10 = vcmask 769024  }
  0xd0   : > { %v655_v46 = vsel %vm650_vm14, %v647_v60, %v561_v55  ;;  %v524_v63 = vpop.permute.xlu0 %523  ;;  %v656_v0 = vsel %vm650_vm14, %v648_v54, %v562_v59  ;;  %v5064_v54 = vld [vmem:[%s6899_s3 + $0x94] ss:$12 sps:$4 sm:$0xff]   ;;  %v5062_v55 = vld [vmem:[%s6899_s3 + $0x90] ss:$12 sps:$4 sm:$0xff]   ;;  %v5067_v59 = vld [vmem:[%s6899_s3 + $0xac] ss:$12 sps:$4 sm:$0xff]  }
  0xd1   : > { %v532_v34 = vsel %vm525_vm9, %v4941_v58, %v524_v63  ;;  %v663_v47 = vpack.c.bf16 %v593_v43, %v656_v0  ;;  %v662_v2 = vpack.c.bf16 %v592_v22, %v655_v46  ;;  %v5061_v43 = vld [vmem:[%s6899_s3 + $0x7c] ss:$12 sps:$4 sm:$0xff]   ;;  %v5068_v22 = vld [vmem:[%s6899_s3 + $0xc0] ss:$12 sps:$4 sm:$0xff]   ;;  %v5071_v63 = vld [vmem:[%s6899_s3 + $0xd8] ss:$12 sps:$4 sm:$0xff]  }
  0xd2   : > { %v649_v3 = vsel %vm642_vm11, %v641_v61, %v532_v34  ;;  %v5065_v60 = vld [vmem:[%s6899_s3 + $0xa8] ss:$12 sps:$4 sm:$0xff]   ;;  %v5070_v61 = vld [vmem:[%s6899_s3 + $0xc4] ss:$12 sps:$4 sm:$0xff]   ;;  %v5079_v34 = vld [vmem:[%s6899_s3 + $0x10c] ss:$12 sps:$4 sm:$0xff]  }
  0xd3   : > { %v657_v4 = vsel %vm650_vm14, %v649_v3, %v563_v1  ;;  %v694_v5 = vand.u32 %v5682_v9, %v663_v47  ;;  %v691_v31 = vand.u32 %v5682_v9, %v662_v2  ;;  %v5073_v46 = vld [vmem:[%s6899_s3 + $0xdc] ss:$12 sps:$4 sm:$0xff]   ;;  %v5076_v1 = vld [vmem:[%s6899_s3 + $0xf4] ss:$12 sps:$4 sm:$0xff]   ;;  %v5082_v2 = vld [vmem:[%s6899_s3 + $0x124] ss:$12 sps:$4 sm:$0xff]  }
  0xd4   : > { %v586_v12 = vpop.permute.xlu0 %585  ;;  %v5074_v0 = vld [vmem:[%s6899_s3 + $0xf0] ss:$12 sps:$4 sm:$0xff]   ;;  %v5077_v47 = vld [vmem:[%s6899_s3 + $0x108] ss:$12 sps:$4 sm:$0xff]   ;;  %v5080_v3 = vld [vmem:[%s6899_s3 + $0x120] ss:$12 sps:$4 sm:$0xff]  }
  0xd5   : > { %v594_v6 = vsel %vm587_vm13, %v4951_v38, %v586_v12  ;;  %781 = vmatprep.subr.bf16.mxu0 %v694_v5  ;;  %v5083_v5 = vld [vmem:[%s6899_s3 + $0x138] ss:$12 sps:$4 sm:$0xff]   ;;  %v5086_v12 = vld [vmem:[%s6899_s3 + $0x150] ss:$12 sps:$4 sm:$0xff]   ;;  %vm2348_vm9 = vcmask 900096   ;;  %vm2698_vm11 = vcmask 400384  }
  0xd6   : > { %v664_v10 = vpack.c.bf16 %v594_v6, %v657_v4  ;;  %782 = vmatpush1.bf16.msra.mxu0 %v691_v31  ;;  %v5085_v4 = vld [vmem:[%s6899_s3 + $0x13c] ss:$12 sps:$4 sm:$0xff]   ;;  %v5088_v31 = vld [vmem:[%s6899_s3 + $0x154] ss:$12 sps:$4 sm:$0xff]   ;;  %v5091_v6 = vld [vmem:[%s6899_s3 + $0x16c] ss:$12 sps:$4 sm:$0xff]  }
  0xd7   : > { %1988 = vmatprep.subr.bf16.mxu0 %v5046_v57 }
  0xd8   : > { %v697_v11 = vand.u32 %v5682_v9, %v664_v10 }
  0xd9   : > { %3981 = vmatmul.mubr.msk.bf16.vlgmr.msra.gmra.mrb[4].mxu0 %vm672_vm15, %v5720_v56 }
  0xda   : > { %4496 = vmatpush3.bf16.msra.mxu1 %v697_v11  ;;  %1989 = vmatpush1.bf16.msra.mxu0 %v5044_v30  ;;  %v5089_v11 = vld [vmem:[%s6899_s3 + $0x168] ss:$12 sps:$4 sm:$0xff]  }
  0xdb   : > { %1990 = vmatprep.subr.bf16.mxu0 %v5049_v62 }
  0xdd   : > { %4498 = vmatmul.mubr.msk.bf16.vlgmr.msra.gmra.mrb[4].mxu1 %vm672_vm15, %v5720_v56 }
  0xde   : > { %1991 = vmatpush1.bf16.msra.mxu0 %v5047_v26 }
  0xdf   : > { %v5798_v14 = vpop.permute.xlu1 %669  ;;  %1992 = vmatprep.subr.bf16.mxu0 %v5052_v39 }
  0xe2   : > { %1993 = vmatpush1.bf16.msra.mxu0 %v5050_v33  ;;  %v5128_v33 = vld [vmem:[%s6899_s3 + $0x320] ss:$12 sps:$4 sm:$0xff]  }
  0xe3   : > { %1994 = vmatprep.subr.bf16.mxu0 %v5055_v36  ;;  %v5133_v36 = vld [vmem:[%s6899_s3 + $0x338] ss:$12 sps:$4 sm:$0xff]  }
  0xe6   : > { %1995 = vmatpush1.bf16.msra.mxu0 %v5053_v44  ;;  %v5143_v44 = vld [vmem:[%s6899_s3 + $0x368] ss:$12 sps:$4 sm:$0xff]  }
  0xe7   : > { %1996 = vmatprep.subr.bf16.mxu0 %v5058_v48  ;;  %v5148_v48 = vld [vmem:[%s6899_s3 + $0x380] ss:$12 sps:$4 sm:$0xff]  }
  0xea   : > { %1997 = vmatpush1.bf16.msra.mxu0 %v5056_v53 }
  0xeb   : > { %1998 = vmatprep.subr.bf16.mxu0 %v5061_v43  ;;  %v5149_v43 = vld [vmem:[%s6899_s3 + $0x458] ss:$12 sps:$4 sm:$0xff]  }
  0xee   : > { %1999 = vmatpush1.bf16.msra.mxu0 %v5059_v25 }
  0xef   : > { %2000 = vmatprep.subr.bf16.mxu0 %v5064_v54  ;;  %v5153_v54 = vld [vmem:[%s6899_s3 + $0x398] ss:$12 sps:$4 sm:$0xff]  }
  0xf2   : > { %2001 = vmatpush1.bf16.msra.mxu0 %v5062_v55 }
  0xf3   : > { %2002 = vmatprep.subr.bf16.mxu0 %v5067_v59 }
  0xf6   : > { %2003 = vmatpush1.bf16.msra.mxu0 %v5065_v60 }
  0xf7   : > { %2004 = vmatprep.subr.bf16.mxu0 %v5070_v61 }
  0xfa   : > { %2005 = vmatpush1.bf16.msra.mxu0 %v5068_v22 }
  0xfb   : > { %2006 = vmatprep.subr.bf16.mxu0 %v5073_v46 }
  0xfe   : > { %2007 = vmatpush1.bf16.msra.mxu0 %v5071_v63 }
  0xff   : > { %2008 = vmatprep.subr.bf16.mxu0 %v5076_v1  ;;  %v5157_v1 = vld [vmem:[%s6899_s3 + $0x470] ss:$12 sps:$4 sm:$0xff]  }
 0x102   : > { %2009 = vmatpush1.bf16.msra.mxu0 %v5074_v0 }
 0x103   : > { %2010 = vmatprep.subr.bf16.mxu0 %v5079_v34 }
 0x106   : > { %2011 = vmatpush1.bf16.msra.mxu0 %v5077_v47  ;;  %v5092_v47 = vld [vmem:[%s6899_s3 + $0x180] ss:$12 sps:$4 sm:$0xff]  }
 0x107   : > { %2012 = vmatprep.subr.bf16.mxu0 %v5082_v2  ;;  %v5158_v2 = vld [vmem:[%s6899_s3 + $0x3b0] ss:$12 sps:$4 sm:$0xff]  }
 0x10a   : > { %2013 = vmatpush1.bf16.msra.mxu0 %v5080_v3 }
 0x10b   : > { %2014 = vmatprep.subr.bf16.mxu0 %v5085_v4 }
 0x10e   : > { %2015 = vmatpush1.bf16.msra.mxu0 %v5083_v5  ;;  %v5097_v5 = vld [vmem:[%s6899_s3 + $0x19c] ss:$12 sps:$4 sm:$0xff]  }
 0x10f   : > { %2016 = vmatprep.subr.bf16.mxu0 %v5088_v31 }
 0x112   : > { %2017 = vmatpush1.bf16.msra.mxu0 %v5086_v12 }
 0x113   : > { %2018 = vmatprep.subr.bf16.mxu0 %v5091_v6 }
 0x116   : > { %2019 = vmatpush1.bf16.msra.mxu0 %v5089_v11 }
 0x196   : > { %v733_v15 = vpop.f32.mrb[0].mxu0 }
 0x197   : > { %v735_v20 = vpop.f32.mrb[1].mxu0  ;;  %v5804_v17 = vadd.f32 %v733_v15, %v5798_v14 }
 0x198   : > { %v737_v27 = vpop.f32.mrb[2].mxu0  ;;  %v5801_v41 = vadd.f32 %v735_v20, %v5798_v14 }
 0x199   : > { %v738_v16 = vpop.f32.mrb[3].mxu0  ;;  %v862_v32 = vmax.f32 %v5804_v17, 0.0 }
 0x19a   : > { %v863_v23 = vmax.f32 %v5801_v41, 0.0 }
 0x19b   : > { %v774_v13 = vpop.f32.mrb[0].mxu1 }
 0x19c   : > { %v5807_v18 = vadd.f32 %v774_v13, %v5798_v14  ;;  %v776_v24 = vpop.f32.mrb[1].mxu1 }
 0x19d   : > { %v5811_v56 = vadd.f32 %v776_v24, %v5798_v14  ;;  %v778_v58 = vpop.f32.mrb[2].mxu1 }
 0x19e   : > { %v864_v29 = vmax.f32 %v5807_v18, 0.0  ;;  %v779_v50 = vpop.f32.mrb[3].mxu1  ;;  %v5094_v18 = vld [vmem:[%s6899_s3 + $0x184] ss:$12 sps:$4 sm:$0xff]  }
 0x19f   : > { %v865_v8 = vmax.f32 %v5811_v56, 0.0  ;;  %2029 = vmatprep.subr.bf16.mxu0 %v5094_v18  ;;  %v5119_v18 = vld [vmem:[%s6899_s3 + $0x258] ss:$12 sps:$4 sm:$0xff]  }
 0x1a0   : > { %v4953_v28 = vpack.i.bf16 %v864_v29, %v863_v23 }
 0x1a1   : > { %v4958_v49 = vpack.i.bf16 %v862_v32, %v865_v8 }
 0x1a2   : > { %4954 = vrot.lane.b32.xlu0 %v4953_v28, %s5390_s26 }
 0x1a3   : > { %4959 = vrot.lane.b32.xlu1 %v4958_v49, %s5390_s26 }
 0x1ac   : > { %v5841_v7 = vpop.f32.mrb[4].mxu0 }
 0x1ad   : > { %v5846_v37 = vpop.f32.mrb[5].mxu0  ;;  %v5934_v24 = vadd.f32 %v5841_v7, %v5798_v14 }
 0x1ae   : > { %v819_v38 = vpop.f32.mrb[6].mxu0  ;;  %v5938_v58 = vadd.f32 %v5846_v37, %v5798_v14  ;;  %v5132_v37 = vld [vmem:[%s6899_s3 + $0x3f8] ss:$12 sps:$4 sm:$0xff]  }
 0x1af   : > { %v820_v40 = vpop.f32.mrb[7].mxu0  ;;  %v866_v26 = vmax.f32 %v5934_v24, 0.0  ;;  %v5137_v38 = vld [vmem:[%s6899_s3 + $0x410] ss:$12 sps:$4 sm:$0xff]   ;;  %v5101_v24 = vld [vmem:[%s6899_s3 + $0x1c8] ss:$12 sps:$4 sm:$0xff]  }
 0x1b0   : > { %v5851_v42 = vpop.f32.mrb[4].mxu1  ;;  %v867_v39 = vmax.f32 %v5938_v58, 0.0  ;;  %v5138_v40 = vld [vmem:[%s6899_s3 + $0x350] ss:$12 sps:$4 sm:$0xff]  }
 0x1b1   : > { %v4499_v45 = vpop.f32.mrb[5].mxu1  ;;  %v5964_v17 = vadd.f32 %v5851_v42, %v5798_v14  ;;  %v5123_v14 = vld [vmem:[%s6899_s3 + $0x308] ss:$12 sps:$4 sm:$0xff]   ;;  %v5106_v58 = vld [vmem:[%s6899_s3 + $0x1e4] ss:$12 sps:$4 sm:$0xff]  }
 0x1b2   : > { %v859_v51 = vpop.f32.mrb[6].mxu1  ;;  %v4968_v41 = vpack.i.bf16 %v867_v39, %v866_v26  ;;  %v5142_v42 = vld [vmem:[%s6899_s3 + $0x428] ss:$12 sps:$4 sm:$0xff]   ;;  %v5144_v45 = vld [vmem:[%s6899_s3 + $0x440] ss:$12 sps:$4 sm:$0xff]  }
 0x1b3   : > { %v4500_v52 = vpop.f32.mrb[7].mxu1 }
 0x214   : > { %v4955_v10 = vpop.permute.xlu0 %4954 }
 0x215   : > { %v4957_v15 = vunpack.i.h.bf16 %v4955_v10  ;;  %v4956_v20 = vunpack.i.l.bf16 %v4955_v10  ;;  %v5928_v27 = vpop.permute.xlu1 %4959 }
 0x216   : > { %v4962_v16 = vunpack.i.h.bf16 %v5928_v27  ;;  %v4961_v13 = vunpack.i.l.bf16 %v5928_v27 }
 0x217   : > { %v891_v50 = vsel %vm379_vm0, %v4956_v20, %v4957_v15 }
 0x218   : > { %v892_v28 = vsel %vm379_vm0, %v4957_v15, %v4961_v13  ;;  %v890_v49 = vsel %vm379_vm0, %v4962_v16, %v4956_v20  ;;  %v904_v30 = vmax.f32 %v863_v23, %v891_v50  ;;  %v868_v23 = vmax.f32 %v5964_v17, 0.0  ;;  %v5100_v20 = vld [vmem:[%s6899_s3 + $0x1b4] ss:$12 sps:$4 sm:$0xff]   ;;  %v5098_v16 = vld [vmem:[%s6899_s3 + $0x1b0] ss:$12 sps:$4 sm:$0xff]  }
 0x219   : > { %v903_v57 = vmax.f32 %v862_v32, %v890_v49  ;;  %v5951_v62 = vmax.f32 %v864_v29, %v892_v28  ;;  %v5122_v32 = vld [vmem:[%s6899_s3 + $0x3c8] ss:$12 sps:$4 sm:$0xff]   ;;  %v5127_v29 = vld [vmem:[%s6899_s3 + $0x3e0] ss:$12 sps:$4 sm:$0xff]   ;;  %v5107_v49 = vld [vmem:[%s6899_s3 + $0x1f8] ss:$12 sps:$4 sm:$0xff]  }
 0x21a   : > { %4389 = vmatprep.subr.bf16.mxu1 %v5122_v32  ;;  %v5104_v50 = vld [vmem:[%s6899_s3 + $0x1e0] ss:$12 sps:$4 sm:$0xff]   ;;  %v5109_v28 = vld [vmem:[%s6899_s3 + $0x1fc] ss:$12 sps:$4 sm:$0xff]  }
 0x21b   : > { %917 = vrot.lane.b32.xlu1 %v903_v57, %s5392_s28  ;;  %v4963_v7 = vpack.i.bf16 %v5951_v62, %v904_v30  ;;  %4390 = vmatpush3.bf16.msra.mxu1 %v5123_v14  ;;  %v5121_v17 = vld [vmem:[%s6899_s3 + $0x25c] ss:$12 sps:$4 sm:$0xff]   ;;  %v5131_v14 = vld [vmem:[%s6899_s3 + $0x28c] ss:$12 sps:$4 sm:$0xff]  }
 0x21c   : > { %4391 = vmatprep.subr.bf16.mxu1 %v5127_v29  ;;  %v5124_v32 = vld [vmem:[%s6899_s3 + $0x270] ss:$12 sps:$4 sm:$0xff]   ;;  %v5129_v29 = vld [vmem:[%s6899_s3 + $0x288] ss:$12 sps:$4 sm:$0xff]  }
 0x21d   : > { %4964 = vrot.lane.b32.xlu0 %v4963_v7, %s5392_s28  ;;  %v5118_v7 = vld [vmem:[%s6899_s3 + $0x244] ss:$12 sps:$4 sm:$0xff]  }
 0x21f   : > { %4392 = vmatpush3.bf16.msra.mxu1 %v5128_v33  ;;  %v5136_v33 = vld [vmem:[%s6899_s3 + $0x2a4] ss:$12 sps:$4 sm:$0xff]  }
 0x220   : > { %4393 = vmatprep.subr.bf16.mxu1 %v5132_v37  ;;  %v5134_v37 = vld [vmem:[%s6899_s3 + $0x2a0] ss:$12 sps:$4 sm:$0xff]  }
 0x221   : > { %4969 = vrot.lane.b32.xlu0 %v4968_v41, %s5390_s26  ;;  %v5116_v41 = vld [vmem:[%s6899_s3 + $0x240] ss:$12 sps:$4 sm:$0xff]  }
 0x223   : > { %4394 = vmatpush3.bf16.msra.mxu1 %v5133_v36  ;;  %v5141_v36 = vld [vmem:[%s6899_s3 + $0x2bc] ss:$12 sps:$4 sm:$0xff]  }
 0x224   : > { %4395 = vmatprep.subr.bf16.mxu1 %v5137_v38  ;;  %v5139_v38 = vld [vmem:[%s6899_s3 + $0x2b8] ss:$12 sps:$4 sm:$0xff]  }
 0x225   : > { %888 = vrot.lane.b32.xlu0 %v868_v23, %s5390_s26 }
 0x227   : > { %4396 = vmatpush3.bf16.msra.mxu1 %v5138_v40  ;;  %v5147_v40 = vld [vmem:[%s6899_s3 + $0x2d4] ss:$12 sps:$4 sm:$0xff]  }
 0x228   : > { %4397 = vmatprep.subr.bf16.mxu1 %v5142_v42  ;;  %v5145_v42 = vld [vmem:[%s6899_s3 + $0x2d0] ss:$12 sps:$4 sm:$0xff]  }
 0x22b   : > { %4398 = vmatpush3.bf16.msra.mxu1 %v5143_v44  ;;  %v5152_v44 = vld [vmem:[%s6899_s3 + $0x2ec] ss:$12 sps:$4 sm:$0xff]  }
 0x22c   : > { %4399 = vmatprep.subr.bf16.mxu1 %v5144_v45  ;;  %v5150_v45 = vld [vmem:[%s6899_s3 + $0x2e8] ss:$12 sps:$4 sm:$0xff]  }
 0x22f   : > { %4400 = vmatpush3.bf16.msra.mxu1 %v5148_v48  ;;  %v5156_v48 = vld [vmem:[%s6899_s3 + $0x304] ss:$12 sps:$4 sm:$0xff]  }
 0x230   : > { %4401 = vmatprep.subr.bf16.mxu1 %v5149_v43 }
 0x233   : > { %4402 = vmatpush3.bf16.msra.mxu1 %v5153_v54 }
 0x234   : > { %4403 = vmatprep.subr.bf16.mxu1 %v5157_v1  ;;  %v5154_v1 = vld [vmem:[%s6899_s3 + $0x300] ss:$12 sps:$4 sm:$0xff]  }
 0x237   : > { %4404 = vmatpush3.bf16.msra.mxu1 %v5158_v2 }
 0x238   : > { %4501 = vmatprep.subr.bf16.mxu1 %v5400_v19 }
 0x28d   : > { %v918_v25 = vpop.permute.xlu1 %917 }
 0x28f   : > { %v6008_v51 = vpop.permute.xlu0 %4964 }
 0x290   : > { %v4967_v52 = vunpack.i.h.bf16 %v6008_v51  ;;  %v4966_v53 = vunpack.i.l.bf16 %v6008_v51 }
 0x292   : > { %v931_v55 = vsel %vm435_vm4, %v918_v25, %v4966_v53  ;;  %v932_v59 = vsel %vm435_vm4, %v4966_v53, %v4967_v52 }
 0x293   : > { %v944_v60 = vmax.f32 %v903_v57, %v931_v55  ;;  %v4970_v61 = vpop.permute.xlu0 %4969  ;;  %v945_v22 = vmax.f32 %v904_v30, %v932_v59  ;;  %v5112_v30 = vld [vmem:[%s6899_s3 + $0x214] ss:$12 sps:$4 sm:$0xff]   ;;  %v5110_v57 = vld [vmem:[%s6899_s3 + $0x210] ss:$12 sps:$4 sm:$0xff]  }
 0x294   : > { %v4972_v46 = vunpack.i.h.bf16 %v4970_v61  ;;  %v4971_v63 = vunpack.i.l.bf16 %v4970_v61 }
 0x295   : > { %v6025_v0 = vpack.c.bf16 %v945_v22, %v945_v22  ;;  %v6027_v34 = vpack.c.bf16 %v944_v60, %v944_v60 }
 0x296   : > { %v893_v3 = vsel %vm379_vm0, %v4961_v13, %v4971_v63  ;;  %v894_v4 = vsel %vm379_vm0, %v4971_v63, %v4972_v46  ;;  %v5103_v13 = vld [vmem:[%s6899_s3 + $0x1cc] ss:$12 sps:$4 sm:$0xff]  }
 0x297   : > { %v889_v31 = vpop.permute.xlu0 %888  ;;  %2020 = vmatprep.mubr.bf16.mxu0 %v6025_v0  ;;  %v6045_v12 = vmax.f32 %v865_v8, %v893_v3  ;;  %v6049_v6 = vmax.f32 %v866_v26, %v894_v4  ;;  %v5095_v8 = vld [vmem:[%s6899_s3 + $0x198] ss:$12 sps:$4 sm:$0xff]  }
 0x298   : > { %v895_v10 = vsel %vm379_vm0, %v4972_v46, %v889_v31  ;;  %2021 = vmatmul.mubr.bf16.vlgmr.msra.gmra.mrb[8].mxu0 %v6027_v34  ;;  %v6058_v15 = vmax.f32 %v868_v23, %v889_v31  ;;  %v5115_v26 = vld [vmem:[%s6899_s3 + $0x22c] ss:$12 sps:$4 sm:$0xff]   ;;  %v5126_v23 = vld [vmem:[%s6899_s3 + $0x274] ss:$12 sps:$4 sm:$0xff]  }
 0x299   : > { %v6056_v11 = vmax.f32 %v867_v39, %v895_v10  ;;  %v4973_v56 = vpack.i.bf16 %v6049_v6, %v6045_v12  ;;  %2030 = vmatpush1.bf16.msra.mxu0 %v5092_v47  ;;  %v5113_v39 = vld [vmem:[%s6899_s3 + $0x228] ss:$12 sps:$4 sm:$0xff]   ;;  %v5159_v4 = vld [vmem:[%s6899_s3 + $0x318] ss:$12 sps:$4 sm:$0xff]   ;;  %v5163_v10 = vld [vmem:[%s6899_s3 + $0x330] ss:$12 sps:$4 sm:$0xff]  }
 0x29a   : > { %2031 = vmatprep.subr.bf16.mxu0 %v5097_v5 }
 0x29b   : > { %4974 = vrot.lane.b32.xlu1 %v4973_v56, %s5392_s28  ;;  %v4978_v27 = vpack.i.bf16 %v6058_v15, %v6056_v11  ;;  %v5170_v56 = vld [vmem:[%s6899_s3 + $0x4b8] ss:$12 sps:$4 sm:$0x1f]  }
 0x29d   : > { %2032 = vmatpush1.bf16.msra.mxu0 %v5095_v8  ;;  %v5169_v8 = vld [vmem:[%s6899_s3 + $0x34c] ss:$12 sps:$4 sm:$0xff]  }
 0x29e   : > { %2033 = vmatprep.subr.bf16.mxu0 %v5100_v20  ;;  %v5167_v20 = vld [vmem:[%s6899_s3 + $0x348] ss:$12 sps:$4 sm:$0xff]  }
 0x29f   : > { %4979 = vrot.lane.b32.xlu1 %v4978_v27, %s5392_s28  ;;  %v1986_v27 = vand.u32 %v5170_v56, %v5682_v9  ;;  %v5236_v56 = vld [vmem:[%s6899_s3 + $0x278] ss:$12 sps:$4 sm:$0xff]  }
 0x2a1   : > { %2034 = vmatpush1.bf16.msra.mxu0 %v5098_v16 }
 0x2a2   : > { %2035 = vmatprep.subr.bf16.mxu0 %v5103_v13  ;;  %v5173_v13 = vld [vmem:[%s6899_s3 + $0x364] ss:$12 sps:$4 sm:$0xff]  }
 0x2a5   : > { %2036 = vmatpush1.bf16.msra.mxu0 %v5101_v24  ;;  %v5171_v24 = vld [vmem:[%s6899_s3 + $0x360] ss:$12 sps:$4 sm:$0xff]  }
 0x2a6   : > { %2037 = vmatprep.subr.bf16.mxu0 %v5106_v58 }
 0x2a9   : > { %2038 = vmatpush1.bf16.msra.mxu0 %v5104_v50  ;;  %v5174_v50 = vld [vmem:[%s6899_s3 + $0x378] ss:$12 sps:$4 sm:$0xff]  }
 0x2aa   : > { %2039 = vmatprep.subr.bf16.mxu0 %v5109_v28  ;;  %v5179_v28 = vld [vmem:[%s6899_s3 + $0x394] ss:$12 sps:$4 sm:$0xff]  }
 0x2ad   : > { %2040 = vmatpush1.bf16.msra.mxu0 %v5107_v49  ;;  %v5177_v49 = vld [vmem:[%s6899_s3 + $0x390] ss:$12 sps:$4 sm:$0xff]  }
 0x2ae   : > { %2041 = vmatprep.subr.bf16.mxu0 %v5112_v30  ;;  %v5182_v30 = vld [vmem:[%s6899_s3 + $0x3ac] ss:$12 sps:$4 sm:$0xff]  }
 0x2b1   : > { %2042 = vmatpush1.bf16.msra.mxu0 %v5110_v57  ;;  %v5180_v57 = vld [vmem:[%s6899_s3 + $0x3a8] ss:$12 sps:$4 sm:$0xff]  }
 0x2b2   : > { %2043 = vmatprep.subr.bf16.mxu0 %v5115_v26  ;;  %v5185_v26 = vld [vmem:[%s6899_s3 + $0x3c4] ss:$12 sps:$4 sm:$0xff]  }
 0x2b5   : > { %2044 = vmatpush1.bf16.msra.mxu0 %v5113_v39  ;;  %v5183_v39 = vld [vmem:[%s6899_s3 + $0x3c0] ss:$12 sps:$4 sm:$0xff]  }
 0x2b6   : > { %2045 = vmatprep.subr.bf16.mxu0 %v5118_v7  ;;  %v5188_v7 = vld [vmem:[%s6899_s3 + $0x3dc] ss:$12 sps:$4 sm:$0xff]  }
 0x2b9   : > { %2046 = vmatpush1.bf16.msra.mxu0 %v5116_v41  ;;  %v5186_v41 = vld [vmem:[%s6899_s3 + $0x3d8] ss:$12 sps:$4 sm:$0xff]  }
 0x2ba   : > { %2047 = vmatprep.subr.bf16.mxu0 %v5121_v17  ;;  %v5191_v17 = vld [vmem:[%s6899_s3 + $0x3f4] ss:$12 sps:$4 sm:$0xff]  }
 0x2bd   : > { %2048 = vmatpush1.bf16.msra.mxu0 %v5119_v18  ;;  %v5189_v18 = vld [vmem:[%s6899_s3 + $0x3f0] ss:$12 sps:$4 sm:$0xff]  }
 0x2be   : > { %2049 = vmatprep.subr.bf16.mxu0 %v5126_v23  ;;  %v5194_v23 = vld [vmem:[%s6899_s3 + $0x40c] ss:$12 sps:$4 sm:$0xff]  }
 0x2c1   : > { %2050 = vmatpush1.bf16.msra.mxu0 %v5124_v32  ;;  %v5192_v32 = vld [vmem:[%s6899_s3 + $0x408] ss:$12 sps:$4 sm:$0xff]  }
 0x2c2   : > { %2051 = vmatprep.subr.bf16.mxu0 %v5131_v14  ;;  %v5197_v14 = vld [vmem:[%s6899_s3 + $0x424] ss:$12 sps:$4 sm:$0xff]  }
 0x2c5   : > { %2052 = vmatpush1.bf16.msra.mxu0 %v5129_v29  ;;  %v5195_v29 = vld [vmem:[%s6899_s3 + $0x420] ss:$12 sps:$4 sm:$0xff]  }
 0x2c6   : > { %2053 = vmatprep.subr.bf16.mxu0 %v5136_v33  ;;  %v5200_v33 = vld [vmem:[%s6899_s3 + $0x43c] ss:$12 sps:$4 sm:$0xff]  }
 0x2c9   : > { %2054 = vmatpush1.bf16.msra.mxu0 %v5134_v37  ;;  %v5198_v37 = vld [vmem:[%s6899_s3 + $0x438] ss:$12 sps:$4 sm:$0xff]  }
 0x2ca   : > { %2055 = vmatprep.subr.bf16.mxu0 %v5141_v36  ;;  %v5203_v36 = vld [vmem:[%s6899_s3 + $0x454] ss:$12 sps:$4 sm:$0xff]  }
 0x2cd   : > { %2056 = vmatpush1.bf16.msra.mxu0 %v5139_v38  ;;  %v5201_v38 = vld [vmem:[%s6899_s3 + $0x450] ss:$12 sps:$4 sm:$0xff]  }
 0x2ce   : > { %2057 = vmatprep.subr.bf16.mxu0 %v5147_v40  ;;  %v5206_v40 = vld [vmem:[%s6899_s3 + $0x46c] ss:$12 sps:$4 sm:$0xff]  }
 0x2d1   : > { %2058 = vmatpush1.bf16.msra.mxu0 %v5145_v42  ;;  %v5204_v42 = vld [vmem:[%s6899_s3 + $0x468] ss:$12 sps:$4 sm:$0xff]  }
 0x2d2   : > { %2059 = vmatprep.subr.bf16.mxu0 %v5152_v44  ;;  %v5209_v44 = vld [vmem:[%s6899_s3 + $0x484] ss:$12 sps:$4 sm:$0xff]  }
 0x2d5   : > { %2060 = vmatpush1.bf16.msra.mxu0 %v5150_v45  ;;  %v5207_v45 = vld [vmem:[%s6899_s3 + $0x480] ss:$12 sps:$4 sm:$0xff]  }
 0x2d6   : > { %2070 = vmatprep.subr.bf16.mxu0 %v5156_v48  ;;  %v5212_v48 = vld [vmem:[%s6899_s3 + $0x49c] ss:$12 sps:$4 sm:$0xff]  }
 0x30d   : > { %v4975_v53 = vpop.permute.xlu1 %4974 }
 0x30e   : > { %v4977_v43 = vunpack.i.h.bf16 %v4975_v53  ;;  %v4976_v25 = vunpack.i.l.bf16 %v4975_v53  ;;  %v5215_v53 = vld [vmem:[%s6899_s3 + $0x4b4] ss:$12 sps:$4 sm:$0x1f]  }
 0x310   : > { %v933_v54 = vsel %vm435_vm4, %v4967_v52, %v4976_v25  ;;  %v934_v55 = vsel %vm435_vm4, %v4976_v25, %v4977_v43  ;;  %v5161_v52 = vld [vmem:[%s6899_s3 + $0x31c] ss:$12 sps:$4 sm:$0xff]  }
 0x311   : > { %v946_v59 = vmax.f32 %v5951_v62, %v933_v54  ;;  %v4980_v60 = vpop.permute.xlu1 %4979  ;;  %v947_v61 = vmax.f32 %v6045_v12, %v934_v55  ;;  %v5162_v12 = vld [vmem:[%s6899_s3 + $0x488] ss:$12 sps:$4 sm:$0xff]   ;;  %v5213_v25 = vld [vmem:[%s6899_s3 + $0x4b0] ss:$12 sps:$4 sm:$0x1f]   ;;  %v1983_v54 = vand.u32 %v5215_v53, %v5682_v9 }
 0x312   : > { %v4982_v22 = vunpack.i.h.bf16 %v4980_v60  ;;  %v4981_v46 = vunpack.i.l.bf16 %v4980_v60  ;;  %v1980_v55 = vand.u32 %v5213_v25, %v5682_v9  ;;  %v5217_v60 = vld [vmem:[%s6899_s3 + $0x8] ss:$12 sps:$4 sm:$0xff]   ;;  %v5219_v9 = vld [vmem:[%s6899_s3 + $0x20] ss:$12 sps:$4 sm:$0xff]  }
 0x313   : > { %v6162_v63 = vpack.c.bf16 %v947_v61, %v947_v61  ;;  %v6167_v47 = vpack.c.bf16 %v946_v59, %v946_v59  ;;  %v5216_v59 = vld [vmem:[%s6899_s3 + $0xc8] ss:$12 sps:$4 sm:$0xff]   ;;  %v5218_v61 = vld [vmem:[%s6899_s3 + $0xe0] ss:$12 sps:$4 sm:$0xff]  }
 0x314   : > { %v935_v51 = vsel %vm435_vm4, %v4977_v43, %v4981_v46  ;;  %v936_v62 = vsel %vm435_vm4, %v4981_v46, %v4982_v22  ;;  %v950_v16 = vmax.f32 %v6058_v15, %v4982_v22  ;;  %vm1975_vm4 = vcmask 334848   ;;  %v5176_v15 = vld [vmem:[%s6899_s3 + $0x37c] ss:$12 sps:$4 sm:$0xff]   ;;  %v5210_v43 = vld [vmem:[%s6899_s3 + $0x498] ss:$12 sps:$4 sm:$0xff]  }
 0x315   : > { %v948_v2 = vmax.f32 %v6049_v6, %v935_v51  ;;  %2061 = vmatprep.mubr.bf16.mxu0 %v6162_v63  ;;  %v949_v3 = vmax.f32 %v6056_v11, %v936_v62  ;;  %v5165_v6 = vld [vmem:[%s6899_s3 + $0x334] ss:$12 sps:$4 sm:$0xff]   ;;  %v5220_v22 = vld [vmem:[%s6899_s3 + $0xf8] ss:$12 sps:$4 sm:$0xff]  }
 0x316   : > { %2062 = vmatmul.mubr.bf16.vlgmr.msra.gmra.mrb[8].mxu0 %v6167_v47  ;;  %v5166_v11 = vld [vmem:[%s6899_s3 + $0x4a0] ss:$12 sps:$4 sm:$0xff]   ;;  %v6217_v58 = vpack.c.bf16 %v950_v16, %v950_v16  ;;  %v5221_v46 = vld [vmem:[%s6899_s3 + $0x38] ss:$12 sps:$4 sm:$0xff]   ;;  %v5224_v51 = vld [vmem:[%s6899_s3 + $0x128] ss:$12 sps:$4 sm:$0xff]  }
 0x317   : > { %2071 = vmatpush1.bf16.msra.mxu0 %v5154_v1  ;;  %v956_v5 = vpack.c.bf16 %v949_v3, %v949_v3  ;;  %v6181_v31 = vpack.c.bf16 %v948_v2, %v948_v2  ;;  %v5222_v1 = vld [vmem:[%s6899_s3 + $0x110] ss:$12 sps:$4 sm:$0xff]   ;;  %v5226_v62 = vld [vmem:[%s6899_s3 + $0x140] ss:$12 sps:$4 sm:$0xff]   ;;  %v5228_v3 = vld [vmem:[%s6899_s3 + $0x158] ss:$12 sps:$4 sm:$0xff]  }
 0x318   : > { %2072 = vmatprep.subr.bf16.mxu0 %v5161_v52  ;;  %v5225_v52 = vld [vmem:[%s6899_s3 + $0x68] ss:$12 sps:$4 sm:$0xff]   ;;  %v5227_v2 = vld [vmem:[%s6899_s3 + $0x80] ss:$12 sps:$4 sm:$0xff]  }
 0x319   : > { %2102 = vmatprep.mubr.bf16.mxu0 %v956_v5  ;;  %2264 = vmatprep.mubr.bf16.mxu1 %v956_v5  ;;  %v5230_v5 = vld [vmem:[%s6899_s3 + $0x170] ss:$12 sps:$4 sm:$0xff]   ;;  %v5242_v16 = vld [vmem:[%s6899_s3 + $0x2c0] ss:$12 sps:$4 sm:$0xff]  }
 0x31a   : > { %2265 = vmatmul.mubr.bf16.vlgmr.msra.gmra.mrb[8].mxu1 %v6181_v31 }
 0x31b   : > { %2073 = vmatpush1.bf16.msra.mxu0 %v5159_v4  ;;  %4502 = vmatpush3.bf16.msra.mxu1 %v5162_v12  ;;  %v5229_v4 = vld [vmem:[%s6899_s3 + $0x98] ss:$12 sps:$4 sm:$0xff]   ;;  %v5232_v12 = vld [vmem:[%s6899_s3 + $0x248] ss:$12 sps:$4 sm:$0xff]  }
 0x31c   : > { %2074 = vmatprep.subr.bf16.mxu0 %v5165_v6  ;;  %4503 = vmatprep.subr.bf16.mxu1 %v5400_v19  ;;  %v5233_v6 = vld [vmem:[%s6899_s3 + $0x188] ss:$12 sps:$4 sm:$0xff]  }
 0x31d   : > { %4507 = vmatprep.mubr.msk.bf16.mxu1 %vm5401_vm3, %v5400_v19 }
 0x31f   : > { %2075 = vmatpush1.bf16.msra.mxu0 %v5163_v10  ;;  %4504 = vmatpush3.bf16.msra.mxu1 %v5166_v11  ;;  %v5234_v10 = vld [vmem:[%s6899_s3 + $0x260] ss:$12 sps:$4 sm:$0xff]  }
 0x320   : > { %2076 = vmatprep.subr.bf16.mxu0 %v5169_v8  ;;  %4505 = vmatprep.subr.bf16.mxu1 %v5400_v19  ;;  %v5235_v11 = vld [vmem:[%s6899_s3 + $0x1a0] ss:$12 sps:$4 sm:$0xff]   ;;  %v5237_v8 = vld [vmem:[%s6899_s3 + $0x1b8] ss:$12 sps:$4 sm:$0xff]  }
 0x323   : > { %2077 = vmatpush1.bf16.msra.mxu0 %v5167_v20  ;;  %4506 = vmatpush3.bf16.msra.mxu1 %v1986_v27  ;;  %v5240_v20 = vld [vmem:[%s6899_s3 + $0x2a8] ss:$12 sps:$4 sm:$0xff]  }
 0x324   : > { %2078 = vmatprep.subr.bf16.mxu0 %v5173_v13  ;;  %v5241_v27 = vld [vmem:[%s6899_s3 + $0x1e8] ss:$12 sps:$4 sm:$0xff]   ;;  %v5243_v13 = vld [vmem:[%s6899_s3 + $0x200] ss:$12 sps:$4 sm:$0xff]  }
 0x326   : > { %4508 = vmatmul.mubr.msk.bf16.vlgmr.msra.gmra.mrb[12].mxu1 %vm1975_vm4, %v6217_v58 }
 0x327   : > { %2079 = vmatpush1.bf16.msra.mxu0 %v5171_v24  ;;  %2453 = vmatprep.mubr.bf16.mxu1 %v5398_v21  ;;  %v5244_v24 = vld [vmem:[%s6899_s3 + $0x2d8] ss:$12 sps:$4 sm:$0xff]  }
 0x328   : > { %2080 = vmatprep.subr.bf16.mxu0 %v5176_v15  ;;  %v5246_v15 = vld [vmem:[%s6899_s3 + $0x2f0] ss:$12 sps:$4 sm:$0xff]  }
 0x32b   : > { %2081 = vmatpush1.bf16.msra.mxu0 %v5174_v50  ;;  %v5247_v50 = vld [vmem:[%s6899_s3 + $0x230] ss:$12 sps:$4 sm:$0xff]  }
 0x32c   : > { %2082 = vmatprep.subr.bf16.mxu0 %v5179_v28 }
 0x32f   : > { %2083 = vmatpush1.bf16.msra.mxu0 %v5177_v49 }
 0x330   : > { %2084 = vmatprep.subr.bf16.mxu0 %v5182_v30 }
 0x333   : > { %2085 = vmatpush1.bf16.msra.mxu0 %v5180_v57 }
 0x334   : > { %2086 = vmatprep.subr.bf16.mxu0 %v5185_v26 }
 0x337   : > { %2087 = vmatpush1.bf16.msra.mxu0 %v5183_v39 }
 0x338   : > { %2088 = vmatprep.subr.bf16.mxu0 %v5188_v7 }
 0x33b   : > { %2089 = vmatpush1.bf16.msra.mxu0 %v5186_v41 }
 0x33c   : > { %2090 = vmatprep.subr.bf16.mxu0 %v5191_v17 }
 0x33f   : > { %2091 = vmatpush1.bf16.msra.mxu0 %v5189_v18 }
 0x340   : > { %2092 = vmatprep.subr.bf16.mxu0 %v5194_v23 }
 0x343   : > { %2093 = vmatpush1.bf16.msra.mxu0 %v5192_v32 }
 0x344   : > { %2094 = vmatprep.subr.bf16.mxu0 %v5197_v14 }
 0x347   : > { %2095 = vmatpush1.bf16.msra.mxu0 %v5195_v29 }
 0x348   : > { %2096 = vmatprep.subr.bf16.mxu0 %v5200_v33 }
 0x34b   : > { %2097 = vmatpush1.bf16.msra.mxu0 %v5198_v37 }
 0x34c   : > { %2098 = vmatprep.subr.bf16.mxu0 %v5203_v36 }
 0x34f   : > { %2099 = vmatpush1.bf16.msra.mxu0 %v5201_v38 }
 0x350   : > { %2100 = vmatprep.subr.bf16.mxu0 %v5206_v40 }
 0x353   : > { %2101 = vmatpush1.bf16.msra.mxu0 %v5204_v42 }
 0x354   : > { %2111 = vmatprep.subr.bf16.mxu0 %v5209_v44 }
 0x356   : > { %2103 = vmatmul.mubr.bf16.vlgmr.msra.gmra.mrb[8].mxu0 %v6181_v31  ;;  %v5231_v31 = vld [vmem:[%s6899_s3 + $0xb0] ss:$12 sps:$4 sm:$0xff]  }
 0x357   : > { %2112 = vmatpush1.bf16.msra.mxu0 %v5207_v45  ;;  %2143 = vmatprep.mubr.bf16.mxu0 %v5398_v21 }
 0x358   : > { %2113 = vmatprep.subr.bf16.mxu0 %v5212_v48 }
 0x35b   : > { %2114 = vmatpush1.bf16.msra.mxu0 %v5210_v43 }
 0x35c   : > { %2115 = vmatprep.subr.bf16.mxu0 %v1983_v54 }
 0x35f   : > { %2116 = vmatpush1.bf16.msra.mxu0 %v1980_v55  ;;  %v2395_v55 = vld [vmem:[%s6901_s5 + $0x8] sm:$0xff] }
 0x360   : > { %4345 = vmatprep.subr.bf16.mxu0 %v5216_v59  ;;  %v2394_v59 = vld [vmem:[%s6901_s5] sm:$0xff] }
 0x362   : > { %4136 = vmatmul.mubr.msk.bf16.vlgmr.msra.gmra.mrb[8].mxu0 %vm1975_vm4, %v6217_v58  ;;  %v5245_v58 = vld [vmem:[%s6899_s3 + $0x218] ss:$12 sps:$4 sm:$0xff]  }
 0x363   : > { %4346 = vmatpush3.bf16.msra.mxu0 %v5217_v60  ;;  %2184 = vmatprep.mubr.bf16.mxu0 %v6025_v0  ;;  %v5223_v0 = vld [vmem:[%s6899_s3 + $0x50] ss:$12 sps:$4 sm:$0xff]  }
 0x364   : > { %4347 = vmatprep.subr.bf16.mxu0 %v5218_v61 }
 0x367   : > { %4348 = vmatpush3.bf16.msra.mxu0 %v5219_v9 }
 0x368   : > { %4349 = vmatprep.subr.bf16.mxu0 %v5220_v22 }
 0x36b   : > { %4350 = vmatpush3.bf16.msra.mxu0 %v5221_v46 }
 0x36c   : > { %4351 = vmatprep.subr.bf16.mxu0 %v5222_v1 }
 0x36f   : > { %4352 = vmatpush3.bf16.msra.mxu0 %v5223_v0 }
 0x370   : > { %4353 = vmatprep.subr.bf16.mxu0 %v5224_v51 }
 0x373   : > { %4354 = vmatpush3.bf16.msra.mxu0 %v5225_v52 }
 0x374   : > { %4355 = vmatprep.subr.bf16.mxu0 %v5226_v62 }
 0x377   : > { %4356 = vmatpush3.bf16.msra.mxu0 %v5227_v2 }
 0x378   : > { %4357 = vmatprep.subr.bf16.mxu0 %v5228_v3 }
 0x37b   : > { %4358 = vmatpush3.bf16.msra.mxu0 %v5229_v4 }
 0x37c   : > { %4359 = vmatprep.subr.bf16.mxu0 %v5230_v5 }
 0x37f   : > { %4360 = vmatpush3.bf16.msra.mxu0 %v5231_v31 }
 0x380   : > { %4367 = vmatprep.subr.bf16.mxu0 %v5232_v12 }
 0x382   : > { %2185 = vmatmul.mubr.bf16.vlgmr.msra.gmra.mrb[12].mxu0 %v6027_v34  ;;  %v5238_v34 = vld [vmem:[%s6899_s3 + $0x290] ss:$12 sps:$4 sm:$0xff]  }
 0x383   : > { %4368 = vmatpush3.bf16.msra.mxu0 %v5233_v6  ;;  %2224 = vmatprep.mubr.bf16.mxu0 %v6162_v63  ;;  %v5239_v63 = vld [vmem:[%s6899_s3 + $0x1d0] ss:$12 sps:$4 sm:$0xff]  }
 0x384   : > { %4369 = vmatprep.subr.bf16.mxu0 %v5234_v10 }
 0x387   : > { %4370 = vmatpush3.bf16.msra.mxu0 %v5235_v11 }
 0x388   : > { %4371 = vmatprep.subr.bf16.mxu0 %v5236_v56 }
 0x38b   : > { %4372 = vmatpush3.bf16.msra.mxu0 %v5237_v8 }
 0x38c   : > { %4373 = vmatprep.subr.bf16.mxu0 %v5238_v34 }
 0x38f   : > { %4374 = vmatpush3.bf16.msra.mxu0 %v5239_v63 }
 0x390   : > { %4375 = vmatprep.subr.bf16.mxu0 %v5240_v20 }
 0x393   : > { %4376 = vmatpush3.bf16.msra.mxu0 %v5241_v27 }
 0x394   : > { %4377 = vmatprep.subr.bf16.mxu0 %v5242_v16 }
 0x397   : > { %4378 = vmatpush3.bf16.msra.mxu0 %v5243_v13 }
 0x398   : > { %4379 = vmatprep.subr.bf16.mxu0 %v5244_v24 }
 0x39b   : > { %4380 = vmatpush3.bf16.msra.mxu0 %v5245_v58 }
 0x39c   : > { %4381 = vmatprep.subr.bf16.mxu0 %v5246_v15 }
 0x39f   : > { %4382 = vmatpush3.bf16.msra.mxu0 %v5247_v50 }
 0x3a0   : > { %2627 = vmatprep.subr.bf16.mxu0 %v5398_v21 }
 0x3a2   : > { %2225 = vmatmul.mubr.bf16.vlgmr.msra.gmra.mrb[16].mxu0 %v6167_v47 }
 0x3ed   : > { %v4405_v28 = vpop.f32.mrb[8].mxu1 }
 0x3ee   : > { %v4406_v49 = vpop.f32.mrb[9].mxu1 }
 0x3ef   : > { %v4407_v30 = vadd.f32 %v4406_v49, %v4405_v28  ;;  %v4408_v57 = vpop.f32.mrb[10].mxu1 }
 0x3f0   : > { %v4409_v26 = vpop.f32.mrb[11].mxu1 }
 0x3f9   : > { %v2306_v39 = vpop.f32.mrb[12].mxu1 }
 0x3fa   : > { %v4509_v7 = vpop.f32.mrb[13].mxu1 }
 0x3fb   : > { %v2309_v41 = vpop.f32.mrb[14].mxu1 }
 0x3fc   : > { %v4510_v17 = vpop.f32.mrb[15].mxu1 }
 0x435   : > { %v2145_v18 = vpop.f32.mrb[8].mxu0 }
 0x436   : > { %2360 = vrot.lane.b32.xlu1 %v2145_v18, %s5402_s24  ;;  %v2147_v23 = vpop.f32.mrb[9].mxu0 }
 0x437   : > { %v2149_v32 = vpop.f32.mrb[10].mxu0  ;;  %v4983_v14 = vpack.i.bf16 %v2147_v23, %v2145_v18 }
 0x438   : > { %v2150_v29 = vpop.f32.mrb[11].mxu0 }
 0x439   : > { %4984 = vrot.lane.b32.xlu0 %v4983_v14, %s5390_s26 }
 0x43a   : > { %4989 = vrot.lane.b32.xlu1 %v4983_v14, %s6910_s25 }
 0x43d   : > { %4994 = vrot.lane.b32.xlu0 %v4983_v14, %s5403_s29 }
 0x43e   : > { %4999 = vrot.lane.b32.xlu1 %v4983_v14, %s5404_s16  ;;  %s321_s16 = sand.u32 1, %s5380_s10  }
 0x43f   : > { %s322_s14 = scalar_lea.vmem [#allocation2], %s321_s16  ;;  %s3907_s25 = scalar_lea.sflag [#allocation3], %s321_s16 }
 0x440   : > { %s3919_s22 = sshll.u32 %s322_s14, 4  ;;  %s6856_s22 = int_to_ptr.vmem [resolvable:$true] %s3919_s22 }
 0x441   : > { %5004 = vrot.lane.b32.xlu0 %v4983_v14, %s5405_s17 }
 0x445   : > { %5009 = vrot.lane.b32.xlu0 %v4983_v14, %s6911_s21 }
 0x449   : > { %5014 = vrot.lane.b32.xlu0 %v4983_v14, %s5406_s27 }
 0x44d   : > { %2398 = vperm.xlu0 %5023, %v2394_v59   ;;  %v5249_v59 = vld [vmem:[%s6902_s6] sm:$0xff]  }
 0x44e   : > { %2628 = vmatpush1.bf16.msra.mxu0 %v5249_v59 }
 0x44f   : > { %2629 = vmatprep.subr.bf16.mxu0 %v5398_v21 }
 0x455   : > { %v4361_v47 = vpop.f32.mrb[12].mxu0 }
 0x456   : > { %v4362_v33 = vpop.f32.mrb[13].mxu0 }
 0x457   : > { %v4363_v37 = vadd.f32 %v4362_v33, %v4361_v47  ;;  %v4364_v36 = vpop.f32.mrb[14].mxu0 }
 0x458   : > { %v4365_v38 = vpop.f32.mrb[15].mxu0 }
 0x475   : > { %v4383_v40 = vpop.f32.mrb[16].mxu0 }
 0x476   : > { %v4384_v42 = vpop.f32.mrb[17].mxu0 }
 0x477   : > { %v4385_v44 = vadd.f32 %v4384_v42, %v4383_v40  ;;  %v4386_v45 = vpop.f32.mrb[18].mxu0 }
 0x478   : > { %v4387_v48 = vpop.f32.mrb[19].mxu0 }
 0x479   : > { %v2227_v53 = vadd.f32 %v4385_v44, %v4363_v37  ;;  %v5248_v37 = vld [vmem:[%s6900_s4] sm:$0xff]  }
 0x47b   : > { %v2267_v43 = vadd.f32 %v4407_v30, %v2227_v53 }
 0x47d   : > { %v2307_v25 = vadd.f32 %v2306_v39, %v2267_v43 }
 0x47f   : > { %v5018_v54 = vpack.i.bf16 %v2307_v25, %v2147_v23 }
 0x481   : > { %5019 = vrot.lane.b32.xlu1 %v5018_v54, %s5402_s24 }
 0x485   : > { %2375 = vrot.lane.b32.xlu1 %v2307_v25, %s5406_s27  ;;  %s4340_s27 = sshll.u32 %s5479_s13, 4  ;;  %s5326_s13 = scalar_lea.vmem %s6856_s22, 16 }
 0x486   : > { %s6854_s24 = scalar_lea.hbm %s6905_s9, %s4340_s27  ;;  %p5327_p11 = scmp.ne.s32.totalorder %s6856_s22, %s5326_s13 }
 0x488   : > { %p5328_p12 = pnand %p5327_p11, %p5496_p5 }
 0x489   : > { %2403 = vperm.xlu1 %4952, %v2395_v55  }
 0x48a   : > { %p5329_p13 = pneg %p5328_p12 }
 0x4a8   : > { %v2361_v60 = vpop.permute.xlu1 %2360 }
 0x4ab   : > { %v4985_v61 = vpop.permute.xlu0 %4984 }
 0x4ac   : > { %v4987_v9 = vunpack.i.h.bf16 %v4985_v61  ;;  %v4986_v22 = vunpack.i.l.bf16 %v4985_v61  ;;  %v4990_v46 = vpop.permute.xlu1 %4989 }
 0x4ad   : > { %v4992_v1 = vunpack.i.h.bf16 %v4990_v46  ;;  %v4991_v0 = vunpack.i.l.bf16 %v4990_v46 }
 0x4ae   : > { %v2383_v51 = vpack.c.bf16 %v4987_v9, %v2147_v23  ;;  %v2318_v52 = vsel %vm379_vm0, %v4986_v22, %v4987_v9  ;;  %v5250_v22 = vld [vmem:[%s6902_s6 + $0x8] sm:$0xff]  }
 0x4af   : > { %v2382_v62 = vpack.c.bf16 %v2318_v52, %v2145_v18  ;;  %v4995_v2 = vpop.permute.xlu0 %4994  ;;  %v2325_v31 = vsel %vm407_vm2, %v4991_v0, %v4992_v1  ;;  %vm2366_vm2 = vcmask 777216   ;;  %2630 = vmatpush1.bf16.msra.mxu0 %v5250_v22  ;;  %v5252_v0 = vld [vmem:[%s6902_s6 + $0x18] sm:$0xff]   ;;  %v5254_v52 = vld [vmem:[%s6902_s6 + $0x28] sm:$0xff]  }
 0x4b0   : > { %v4997_v3 = vunpack.i.h.bf16 %v4995_v2  ;;  %v4996_v4 = vunpack.i.l.bf16 %v4995_v2  ;;  %v5000_v5 = vpop.permute.xlu1 %4999  ;;  %2421 = vmatprep.subr.bf16.mxu1 %v2383_v51  ;;  %2631 = vmatprep.subr.bf16.mxu0 %v5398_v21  ;;  %v5253_v51 = vld [vmem:[%s6902_s6 + $0x20] sm:$0xff]   ;;  %v5256_v2 = vld [vmem:[%s6902_s6 + $0x38] sm:$0xff]   ;;  %v5272_v22 = vld [vmem:[%s6903_s7 + $0x48] sm:$0xff]  }
 0x4b1   : > { %2422 = vmatpush1.bf16.msra.mxu1 %v2382_v62  ;;  %v5002_v10 = vunpack.i.h.bf16 %v5000_v5  ;;  %v5001_v11 = vunpack.i.l.bf16 %v5000_v5  ;;  %v5255_v62 = vld [vmem:[%s6902_s6 + $0x30] sm:$0xff]  }
 0x4b2   : > { %v2385_v12 = vpack.c.bf16 %v4997_v3, %v4992_v1  ;;  %v2333_v6 = vsel %vm2332_vm5, %v4996_v4, %v4997_v3  ;;  %v5251_v1 = vld [vmem:[%s6902_s6 + $0x10] sm:$0xff]   ;;  %v5257_v3 = vld [vmem:[%s6902_s6 + $0x40] sm:$0xff]   ;;  %v5258_v4 = vld [vmem:[%s6902_s6 + $0x48] sm:$0xff]  }
 0x4b3   : > { %v2384_v56 = vpack.c.bf16 %v2333_v6, %v2325_v31  ;;  %v5005_v8 = vpop.permute.xlu0 %5004  ;;  %v2341_v20 = vsel %vm2340_vm6, %v5001_v11, %v5002_v10  ;;  %2632 = vmatpush1.bf16.msra.mxu0 %v5251_v1  ;;  %v5259_v5 = vld [vmem:[%s6902_s6 + $0x50] sm:$0xff]   ;;  %v5260_v31 = vld [vmem:[%s6902_s6 + $0x58] sm:$0xff]   ;;  %v2622_v6 = vsel %vm650_vm14, 4294967295, %v5399_v35 }
 0x4b4   : > { %v5007_v34 = vunpack.i.h.bf16 %v5005_v8  ;;  %v5006_v63 = vunpack.i.l.bf16 %v5005_v8  ;;  %2423 = vmatprep.subr.bf16.mxu1 %v2385_v12  ;;  %2633 = vmatprep.subr.bf16.mxu0 %v5398_v21  ;;  %v5261_v12 = vld [vmem:[%s6902_s6 + $0x60] sm:$0xff]  }
 0x4b5   : > { %2424 = vmatpush1.bf16.msra.mxu1 %v2384_v56 }
 0x4b6   : > { %v2387_v27 = vpack.c.bf16 %v5007_v34, %v5002_v10  ;;  %v2349_v16 = vsel %vm2348_vm9, %v5006_v63, %v5007_v34 }
 0x4b7   : > { %v2386_v13 = vpack.c.bf16 %v2349_v16, %v2341_v20  ;;  %v5010_v24 = vpop.permute.xlu0 %5009  ;;  %2634 = vmatpush1.bf16.msra.mxu0 %v5252_v0  ;;  %v5274_v0 = vld [vmem:[%s6903_s7 + $0x54] sm:$0xff]  }
 0x4b8   : > { %2425 = vmatprep.subr.bf16.mxu1 %v2387_v27  ;;  %v5012_v15 = vunpack.i.h.bf16 %v5010_v24  ;;  %v5011_v50 = vunpack.i.l.bf16 %v5010_v24  ;;  %2635 = vmatprep.subr.bf16.mxu0 %v5398_v21 }
 0x4b9   : > { %2426 = vmatpush1.bf16.msra.mxu1 %v2386_v13 }
 0x4ba   : > { %v2356_v39 = vsel %vm491_vm8, %v5011_v50, %v5012_v15  ;;  %vm2411_vm8 = vcmask 588800  }
 0x4bb   : > { %v5015_v58 = vpop.permute.xlu0 %5014  ;;  %2636 = vmatpush1.bf16.msra.mxu0 %v5253_v51 }
 0x4bc   : > { %v5017_v28 = vunpack.i.h.bf16 %v5015_v58  ;;  %v5016_v49 = vunpack.i.l.bf16 %v5015_v58  ;;  %2637 = vmatprep.subr.bf16.mxu0 %v5398_v21  ;;  %v5262_v58 = vld [vmem:[%s6903_s7] sm:$0xff]  }
 0x4be   : > { %v2378_v17 = vsel %vm2377_vm10, %v5016_v49, %v5017_v28  ;;  %v5263_v49 = vld [vmem:[%s6903_s7 + $0x8] sm:$0xff]  }
 0x4bf   : > { %v2390_v47 = vpack.c.bf16 %v2378_v17, %v2378_v17  ;;  %2638 = vmatpush1.bf16.msra.mxu0 %v5254_v52  ;;  %v5275_v52 = vld [vmem:[%s6903_s7 + $0x5c] sm:$0xff]  }
 0x4c0   : > { %2639 = vmatprep.subr.bf16.mxu0 %v5398_v21 }
 0x4c1   : > { %v2416_v33 = vsel %vm626_vm7, %v2390_v47, 0 }
 0x4c3   : > { %2640 = vmatpush1.bf16.msra.mxu0 %v5255_v62  ;;  %v5276_v62 = vld [vmem:[%s6903_s7 + $0x64] sm:$0xff]  }
 0x4c4   : > { %2641 = vmatprep.subr.bf16.mxu0 %v5398_v21 }
 0x4c7   : > { %2642 = vmatpush1.bf16.msra.mxu0 %v5256_v2  ;;  %v5277_v2 = vld [vmem:[%s6903_s7 + $0x6c] ss:$0 sps:$4 sm:$0x11]  }
 0x4c8   : > { %2643 = vmatprep.subr.bf16.mxu0 %v5398_v21 }
 0x4cb   : > { %2644 = vmatpush1.bf16.msra.mxu0 %v5257_v3 }
 0x4cc   : > { %v2399_v36 = vpop.permute.xlu0 %2398  ;;  %2645 = vmatprep.subr.bf16.mxu0 %v5398_v21 }
 0x4cf   : > { %2646 = vmatpush1.bf16.msra.mxu0 %v5258_v4  ;;  %v5278_v4 = vld [vmem:[%s6903_s7 + $0x70] sm:$0xff]  }
 0x4d0   : > { %2647 = vmatprep.subr.bf16.mxu0 %v5398_v21 }
 0x4d3   : > { %2648 = vmatpush1.bf16.msra.mxu0 %v5259_v5 }
 0x4d4   : > { %2649 = vmatprep.subr.bf16.mxu0 %v5398_v21 }
 0x4d7   : > { %2650 = vmatpush1.bf16.msra.mxu0 %v5260_v31  ;;  %v5279_v31 = vld [vmem:[%s6903_s7 + $0x78] sm:$0xff]  }
 0x4d8   : > { %2651 = vmatprep.subr.bf16.mxu0 %v5398_v21 }
 0x4f3   : > { %v5020_v30 = vpop.permute.xlu1 %5019 }
 0x4f4   : > { %v5022_v57 = vunpack.i.h.bf16 %v5020_v30  ;;  %v5021_v26 = vunpack.i.l.bf16 %v5020_v30 }
 0x4f6   : > { %v2367_v7 = vsel %vm2366_vm2, %v2361_v60, %v5021_v26  ;;  %v2368_v41 = vsel %vm2366_vm2, %v5021_v26, %v5022_v57  ;;  %v5264_v57 = vld [vmem:[%s6903_s7 + $0x10] sm:$0xff]  }
 0x4f7   : > { %v2388_v18 = vpack.c.bf16 %v2367_v7, %v2356_v39  ;;  %v2376_v23 = vpop.permute.xlu1 %2375  ;;  %v2389_v32 = vpack.c.bf16 %v2368_v41, %v5012_v15 }
 0x4f8   : > { %v2379_v14 = vsel %vm2377_vm10, %v5017_v28, %v2376_v23 }
 0x4f9   : > { %v2391_v29 = vpack.c.bf16 %v2379_v14, %v2379_v14  ;;  %2427 = vmatprep.subr.bf16.mxu1 %v2389_v32 }
 0x4fa   : > { %2428 = vmatpush1.bf16.msra.mxu1 %v2388_v18 }
 0x4fb   : > { %4139 = vmatprep.subr.msk.bf16.mxu1 %vm626_vm7, %v2391_v29  ;;  %vm2621_vm7 = vcmask 1047552  }
 0x4fc   : > { %v2623_v10 = vsel %vm2621_vm7, %v2622_v6, 0  ;;  %v5281_v6 = vld [vmem:[%s6903_s7 + $0x88] ss:$0 sps:$4 sm:$0x11]  }
 0x4fd   : > { %v2625_v56 = vand.u32 %v5261_v12, %v2623_v10  ;;  %v5280_v12 = vld [vmem:[%s6903_s7 + $0x80] sm:$0xff]  }
 0x4fe   : > { %2430 = vmatpush1.bf16.msra.mxu1 %v2416_v33 }
 0x4ff   : > { %4511 = vmatprep.subr.bf16.mxu1 %v5400_v19  ;;  %2652 = vmatpush1.bf16.msra.mxu0 %v2625_v56 }
 0x501   : > { %4140 = vmatmul.mubr.msk.bf16.vlgmr.msra.gmra.mrb[16].mxu1 %vm2411_vm8, %v5248_v37 }
 0x502   : > { %4519 = vmatprep.mubr.msk.bf16.mxu1 %vm5401_vm3, %v5400_v19  ;;  %4512 = vmatpush3.bf16.msra.mxu1 %v5262_v58  ;;  %v5289_v58 = vld [vmem:[%s6903_s7 + $0xc0] ss:$0 sps:$4 sm:$0x11]  }
 0x503   : > { %4513 = vmatprep.subr.bf16.mxu1 %v5400_v19 }
 0x506   : > { %4514 = vmatpush3.bf16.msra.mxu1 %v5263_v49  ;;  %v5292_v49 = vld [vmem:[%s6903_s7 + $0xd4] sm:$0xff]  }
 0x507   : > { %4515 = vmatprep.subr.bf16.mxu1 %v5400_v19 }
 0x508   : > { %v2404_v44 = vpop.permute.xlu1 %2403 }
 0x50a   : > { %4516 = vmatpush3.bf16.msra.mxu1 %v5264_v57 }
 0x50b   : > { %4517 = vmatprep.subr.bf16.mxu1 %v5400_v19 }
 0x5d4   : > { %v2455_v38 = vpop.f32.mrb[16].mxu1 }
 0x5d5   : > { %v6437_v40 = vadd.f32 %v2455_v38, %v2399_v36  ;;  %v2457_v42 = vpop.f32.mrb[17].mxu1  ;;  %v5265_v38 = vld [vmem:[%s6903_s7 + $0x18] ss:$0 sps:$4 sm:$0x11]  }
 0x5d6   : > { %v2458_v45 = vadd.f32 %v2457_v42, %v2399_v36  ;;  %v2459_v48 = vpop.f32.mrb[18].mxu1 }
 0x5d7   : > { %v2464_v53 = vmax.f32 %v6437_v40, 0.0  ;;  %v6440_v43 = vadd.f32 %v2459_v48, %v2404_v44  ;;  %v2461_v25 = vpop.f32.mrb[19].mxu1  ;;  %v6521_v40 = vsel %vm602_vm1, 65535, %v5398_v21  ;;  %v5267_v21 = vld [vmem:[%s6903_s7 + $0x24] sm:$0xff]  }
 0x5d8   : > { %v2465_v54 = vmax.f32 %v2458_v45, 0.0  ;;  %v2462_v55 = vadd.f32 %v2461_v25, %v2404_v44  ;;  %v2705_v42 = vand.u32 %v5265_v38, %v6521_v40  ;;  %v2938_v3 = vand.u32 %v5277_v2, %v6521_v40  ;;  %v5303_v38 = vld [vmem:[%s6903_s7 + $0x120] sm:$0xff]  }
 0x5d9   : > { %v2466_v60 = vmax.f32 %v6440_v43, 0.0  ;;  %v3015_v10 = vand.u32 %v5281_v6, %v6521_v40  ;;  %v5317_v2 = vld [vmem:[%s6903_s7 + $0x184] ss:$0 sps:$4 sm:$0x11]  }
 0x5da   : > { %v5024_v61 = vpack.i.bf16 %v2465_v54, %v2464_v53  ;;  %v2467_v9 = vmax.f32 %v2462_v55, 0.0  ;;  %4518 = vmatpush3.bf16.msra.mxu1 %v2705_v42  ;;  %v5269_v55 = vld [vmem:[%s6903_s7 + $0x34] ss:$0 sps:$4 sm:$0x11]   ;;  %v5304_v42 = vld [vmem:[%s6903_s7 + $0x128] sm:$0xff]  }
 0x5db   : > { %4523 = vmatprep.subr.bf16.mxu1 %v5400_v19  ;;  %v2783_v59 = vand.u32 %v5269_v55, %v6521_v40  ;;  %v5321_v6 = vld [vmem:[%s6903_s7 + $0x1a0] ss:$0 sps:$4 sm:$0x11]  }
 0x5dc   : > { %v5029_v46 = vpack.i.bf16 %v2467_v9, %v2466_v60  ;;  %5025 = vrot.lane.b32.xlu1 %v5024_v61, %s5390_s26 }
 0x5de   : > { %5030 = vrot.lane.b32.xlu0 %v5029_v46, %s5390_s26  ;;  %v5273_v46 = vld [vmem:[%s6903_s7 + $0x50] ss:$0 sps:$4 sm:$0x11]  }
 0x5df   : > { %v2861_v1 = vand.u32 %v5273_v46, %v6521_v40  ;;  %v5313_v46 = vld [vmem:[%s6903_s7 + $0x168] ss:$0 sps:$4 sm:$0x11]  }
 0x64e   : > { %v5026_v11 = vpop.permute.xlu1 %5025 }
 0x64f   : > { %v5028_v8 = vunpack.i.h.bf16 %v5026_v11  ;;  %v5027_v34 = vunpack.i.l.bf16 %v5026_v11  ;;  %v5282_v11 = vld [vmem:[%s6903_s7 + $0x8c] sm:$0xff]  }
 0x650   : > { %v5031_v63 = vpop.permute.xlu0 %5030 }
 0x651   : > { %v2487_v20 = vmax.f32 %v2465_v54, %v5028_v8  ;;  %v2480_v27 = vsel %vm379_vm0, %v5027_v34, %v5028_v8  ;;  %v5033_v16 = vunpack.i.h.bf16 %v5031_v63  ;;  %v5032_v13 = vunpack.i.l.bf16 %v5031_v63  ;;  %v5268_v54 = vld [vmem:[%s6903_s7 + $0x2c] sm:$0xff]   ;;  %v5283_v8 = vld [vmem:[%s6903_s7 + $0x94] sm:$0xff]   ;;  %v5284_v34 = vld [vmem:[%s6903_s7 + $0x9c] sm:$0xff]  }
 0x652   : > { %v2486_v24 = vmax.f32 %v2464_v53, %v2480_v27  ;;  %v5266_v53 = vld [vmem:[%s6903_s7 + $0x1c] sm:$0xff]   ;;  %v5285_v63 = vld [vmem:[%s6903_s7 + $0xa4] ss:$0 sps:$4 sm:$0x11]   ;;  %v5286_v27 = vld [vmem:[%s6903_s7 + $0xa8] sm:$0xff]  }
 0x653   : > { %v2489_v35 = vmax.f32 %v2467_v9, %v5033_v16  ;;  %v2481_v15 = vsel %vm379_vm0, %v5032_v13, %v5033_v16  ;;  %vm2617_vm0 = vcmask 646144   ;;  %v5271_v9 = vld [vmem:[%s6903_s7 + $0x40] sm:$0xff]   ;;  %v5287_v13 = vld [vmem:[%s6903_s7 + $0xb0] sm:$0xff]  }
 0x654   : > { %v5034_v50 = vpack.i.bf16 %v2487_v20, %v2486_v24  ;;  %v2488_v28 = vmax.f32 %v2466_v60, %v2481_v15  ;;  %v5270_v60 = vld [vmem:[%s6903_s7 + $0x38] sm:$0xff]   ;;  %v5290_v15 = vld [vmem:[%s6903_s7 + $0xc4] sm:$0xff]  }
 0x656   : > { %5035 = vrot.lane.b32.xlu1 %v5034_v50, %s5403_s29  ;;  %v5039_v30 = vpack.i.bf16 %v2489_v35, %v2488_v28 }
 0x658   : > { %5040 = vrot.lane.b32.xlu0 %v5039_v30, %s5403_s29  ;;  %v5293_v30 = vld [vmem:[%s6903_s7 + $0xdc] ss:$0 sps:$4 sm:$0x11]   ;;  %s5407_s29 = smov [#allocation2]  }
 0x659   : > { %v3246_v57 = vand.u32 %v5293_v30, %v6521_v40  ;;  %s5330_s26 = sshll.u32 %s5407_s29, 4  ;;  %s5331_s26 = int_to_ptr.vmem [resolvable:$false] %s5330_s26 }
 0x65a   : > { %s5332_s17 = scalar_lea.vmem %s5331_s26, 32  ;;  %p5333_p0 = scmp.lt.s32.totalorder %s6856_s22, %s5331_s26 }
 0x65b   : > { %p5334_p1 = scmp.lt.s32.totalorder %s5332_s17, %s5326_s13 }
 0x65d   : > { %p5335_p2 = por %p5334_p1, %p5333_p0 }
 0x65f   : > { %p5336_p3 = pnand %p5335_p2, %p5329_p13 }
 0x6c8   : > { %v5036_v26 = vpop.permute.xlu1 %5035 }
 0x6c9   : > { %v5038_v39 = vunpack.i.h.bf16 %v5036_v26  ;;  %v5037_v7 = vunpack.i.l.bf16 %v5036_v26  ;;  %v5294_v26 = vld [vmem:[%s6903_s7 + $0xe0] sm:$0xff]  }
 0x6ca   : > { %v5041_v41 = vpop.permute.xlu0 %5040 }
 0x6cb   : > { %v2502_v17 = vsel %vm2332_vm5, %v5037_v7, %v5038_v39  ;;  %v5043_v18 = vunpack.i.h.bf16 %v5041_v41  ;;  %v5042_v23 = vunpack.i.l.bf16 %v5041_v41  ;;  %v2509_v32 = vmax.f32 %v2487_v20, %v5038_v39  ;;  %v5295_v7 = vld [vmem:[%s6903_s7 + $0xe8] sm:$0xff]   ;;  %v5296_v41 = vld [vmem:[%s6903_s7 + $0xf0] sm:$0xff]  }
 0x6cc   : > { %v2508_v47 = vmax.f32 %v2486_v24, %v2502_v17  ;;  %v3092_v20 = vand.u32 %v5285_v63, %v6521_v40  ;;  %v5288_v24 = vld [vmem:[%s6903_s7 + $0xb8] sm:$0xff]  }
 0x6cd   : > { %v2511_v14 = vmax.f32 %v2489_v35, %v5043_v18  ;;  %v2503_v29 = vsel %vm2332_vm5, %v5042_v23, %v5043_v18  ;;  %v3169_v35 = vand.u32 %v5289_v58, %v6521_v40  ;;  %v5297_v17 = vld [vmem:[%s6903_s7 + $0xf8] ss:$0 sps:$4 sm:$0x11]   ;;  %v5298_v23 = vld [vmem:[%s6903_s7 + $0xfc] sm:$0xff]  }
 0x6ce   : > { %v2510_v33 = vmax.f32 %v2488_v28, %v2503_v29  ;;  %v5291_v28 = vld [vmem:[%s6903_s7 + $0xcc] sm:$0xff]   ;;  %v3323_v18 = vand.u32 %v5297_v17, %v6521_v40 }
 0x6cf   : > { %v2513_v37 = vpack.c.bf16 %v2511_v14, %v2509_v32  ;;  %v5299_v14 = vld [vmem:[%s6903_s7 + $0x104] sm:$0xff]   ;;  %v5300_v29 = vld [vmem:[%s6903_s7 + $0x10c] sm:$0xff]  }
 0x6d0   : > { %v2512_v36 = vpack.c.bf16 %v2510_v33, %v2508_v47  ;;  %v5301_v47 = vld [vmem:[%s6903_s7 + $0x114] ss:$0 sps:$4 sm:$0x11]  }
 0x6d1   : > { %4154 = vmatprep.mubr.msk.bf16.mxu0 %vm2617_vm0, %v2513_v37  ;;  %v3400_v33 = vand.u32 %v5301_v47, %v6521_v40  ;;  %v5302_v37 = vld [vmem:[%s6903_s7 + $0x118] sm:$0xff]  }
 0x6d2   : > { %2660 = vmatmul.mubr.bf16.vlgmr.msra.gmra.mrb[20].mxu0 %v2512_v36 }
 0x7a5   : > { %v2661_v44 = vpop.f32.mrb[20].mxu0 }
 0x7a6   : > { %v2663_v45 = vpop.f32.mrb[21].mxu0 }
 0x7a7   : > { %v2664_v48 = vpop.f32.mrb[22].mxu0 }
 0x7a8   : > { %v6528_v43 = vpack.c.bf16 %v2664_v48, %v2661_v44  ;;  %v2666_v25 = vpop.f32.mrb[23].mxu0  ;;  %v5305_v44 = vld [vmem:[%s6903_s7 + $0x130] ss:$0 sps:$4 sm:$0x11]   ;;  %v5306_v48 = vld [vmem:[%s6903_s7 + $0x134] sm:$0xff]  }
 0x7a9   : > { %v3477_v45 = vand.u32 %v5305_v44, %v6521_v40  ;;  %v5307_v25 = vld [vmem:[%s6903_s7 + $0x13c] sm:$0xff]  }
 0x7aa   : > { %4520 = vmatmul.mubr.msk.bf16.vlgmr.msra.gmra.mrb[20].mxu1 %vm2698_vm11, %v6528_v43  ;;  %v6551_v61 = vshrl.u32 %v6528_v43, 16  ;;  %v2835_v51 = vrot.slane %v6528_v43, 1  ;;  %v2989_v56 = vrot.slane %v6528_v43, 2  ;;  %v3143_v50 = vrot.slane %v6528_v43, 3 }
 0x7ab   : > { %4524 = vmatpush3.bf16.msra.mxu1 %v5266_v53  ;;  %4531 = vmatprep.mubr.msk.bf16.mxu1 %vm5401_vm3, %v5400_v19  ;;  %v3297_v32 = vrot.slane %v6528_v43, 4  ;;  %v3451_v53 = vrot.slane %v6528_v43, 5 }
 0x7ac   : > { %4525 = vmatprep.subr.bf16.mxu1 %v5400_v19  ;;  %v2912_v5 = vrot.slane %v6551_v61, 1  ;;  %v3066_v16 = vrot.slane %v6551_v61, 2  ;;  %v3220_v39 = vrot.slane %v6551_v61, 3  ;;  %v3374_v36 = vrot.slane %v6551_v61, 4 }
 0x7af   : > { %4526 = vmatpush3.bf16.msra.mxu1 %v5267_v21  ;;  %v5308_v21 = vld [vmem:[%s6903_s7 + $0x144] sm:$0xff]  }
 0x7b0   : > { %4527 = vmatprep.subr.bf16.mxu1 %v5400_v19 }
 0x7b3   : > { %4528 = vmatpush3.bf16.msra.mxu1 %v5268_v54  ;;  %v5309_v54 = vld [vmem:[%s6903_s7 + $0x14c] ss:$0 sps:$4 sm:$0x11]  }
 0x7b4   : > { %4529 = vmatprep.subr.bf16.mxu1 %v5400_v19  ;;  %v3554_v55 = vand.u32 %v5309_v54, %v6521_v40 }
 0x7b7   : > { %4530 = vmatpush3.bf16.msra.mxu1 %v2783_v59  ;;  %v5310_v59 = vld [vmem:[%s6903_s7 + $0x150] sm:$0xff]  }
 0x7b8   : > { %4535 = vmatprep.subr.bf16.mxu1 %v5400_v19 }
 0x7ba   : > { %4532 = vmatmul.mubr.msk.bf16.vlgmr.msra.gmra.mrb[20].mxu1 %vm2698_vm11, %v6551_v61 }
 0x7bb   : > { %4536 = vmatpush3.bf16.msra.mxu1 %v5270_v60  ;;  %4543 = vmatprep.mubr.msk.bf16.mxu1 %vm5401_vm3, %v5400_v19  ;;  %v3528_v60 = vrot.slane %v6551_v61, 5 }
 0x7bc   : > { %4537 = vmatprep.subr.bf16.mxu1 %v5400_v19 }
 0x7bf   : > { %4538 = vmatpush3.bf16.msra.mxu1 %v5271_v9  ;;  %v5311_v9 = vld [vmem:[%s6903_s7 + $0x158] sm:$0xff]  }
 0x7c0   : > { %4539 = vmatprep.subr.bf16.mxu1 %v5400_v19 }
 0x7c3   : > { %4540 = vmatpush3.bf16.msra.mxu1 %v5272_v22  ;;  %v5312_v22 = vld [vmem:[%s6903_s7 + $0x160] sm:$0xff]  }
 0x7c4   : > { %4541 = vmatprep.subr.bf16.mxu1 %v5400_v19 }
 0x7c7   : > { %4542 = vmatpush3.bf16.msra.mxu1 %v2861_v1  ;;  %v3631_v1 = vand.u32 %v5313_v46, %v6521_v40 }
 0x7c8   : > { %4547 = vmatprep.subr.bf16.mxu1 %v5400_v19 }
 0x7ca   : > { %4544 = vmatmul.mubr.msk.bf16.vlgmr.msra.gmra.mrb[20].mxu1 %vm2698_vm11, %v2835_v51  ;;  %v3605_v51 = vrot.slane %v6528_v43, 6 }
 0x7cb   : > { %4548 = vmatpush3.bf16.msra.mxu1 %v5274_v0  ;;  %4555 = vmatprep.mubr.msk.bf16.mxu1 %vm5401_vm3, %v5400_v19  ;;  %v5314_v0 = vld [vmem:[%s6903_s7 + $0x16c] sm:$0xff]  }
 0x7cc   : > { %4549 = vmatprep.subr.bf16.mxu1 %v5400_v19 }
 0x7cf   : > { %4550 = vmatpush3.bf16.msra.mxu1 %v5275_v52  ;;  %v5315_v52 = vld [vmem:[%s6903_s7 + $0x174] sm:$0xff]  }
 0x7d0   : > { %4551 = vmatprep.subr.bf16.mxu1 %v5400_v19 }
 0x7d3   : > { %4552 = vmatpush3.bf16.msra.mxu1 %v5276_v62  ;;  %v5316_v62 = vld [vmem:[%s6903_s7 + $0x17c] sm:$0xff]  }
 0x7d4   : > { %4553 = vmatprep.subr.bf16.mxu1 %v5400_v19 }
 0x7d7   : > { %4554 = vmatpush3.bf16.msra.mxu1 %v2938_v3  ;;  %v3708_v3 = vand.u32 %v5317_v2, %v6521_v40 }
 0x7d8   : > { %4559 = vmatprep.subr.bf16.mxu1 %v5400_v19 }
 0x7da   : > { %4556 = vmatmul.mubr.msk.bf16.vlgmr.msra.gmra.mrb[20].mxu1 %vm2698_vm11, %v2912_v5  ;;  %v3682_v5 = vrot.slane %v6551_v61, 6 }
 0x7db   : > { %4560 = vmatpush3.bf16.msra.mxu1 %v5278_v4  ;;  %4567 = vmatprep.mubr.msk.bf16.mxu1 %vm5401_vm3, %v5400_v19  ;;  %v5318_v4 = vld [vmem:[%s6903_s7 + $0x188] sm:$0xff]  }
 0x7dc   : > { %4561 = vmatprep.subr.bf16.mxu1 %v5400_v19 }
 0x7df   : > { %4562 = vmatpush3.bf16.msra.mxu1 %v5279_v31  ;;  %v5319_v31 = vld [vmem:[%s6903_s7 + $0x190] sm:$0xff]  }
 0x7e0   : > { %4563 = vmatprep.subr.bf16.mxu1 %v5400_v19 }
 0x7e3   : > { %4564 = vmatpush3.bf16.msra.mxu1 %v5280_v12  ;;  %v5320_v12 = vld [vmem:[%s6903_s7 + $0x198] sm:$0xff]  }
 0x7e4   : > { %4565 = vmatprep.subr.bf16.mxu1 %v5400_v19 }
 0x7e7   : > { %4566 = vmatpush3.bf16.msra.mxu1 %v3015_v10  ;;  %v3785_v10 = vand.u32 %v5321_v6, %v6521_v40 }
 0x7e8   : > { %4571 = vmatprep.subr.bf16.mxu1 %v5400_v19 }
 0x7ea   : > { %4568 = vmatmul.mubr.msk.bf16.vlgmr.msra.gmra.mrb[20].mxu1 %vm2698_vm11, %v2989_v56  ;;  %v3759_v56 = vrot.slane %v6528_v43, 7  ;;  %v5324_v43 = vld [vmem:[%s6903_s7 + $0x1b4] sm:$0xff]  }
 0x7eb   : > { %4572 = vmatpush3.bf16.msra.mxu1 %v5282_v11  ;;  %4579 = vmatprep.mubr.msk.bf16.mxu1 %vm5401_vm3, %v5400_v19  ;;  %v5322_v11 = vld [vmem:[%s6903_s7 + $0x1a4] sm:$0xff]  }
 0x7ec   : > { %4573 = vmatprep.subr.bf16.mxu1 %v5400_v19 }
 0x7ef   : > { %4574 = vmatpush3.bf16.msra.mxu1 %v5283_v8  ;;  %v5323_v8 = vld [vmem:[%s6903_s7 + $0x1ac] sm:$0xff]  }
 0x7f0   : > { %4575 = vmatprep.subr.bf16.mxu1 %v5400_v19 }
 0x7f3   : > { %4576 = vmatpush3.bf16.msra.mxu1 %v5284_v34  ;;  %v5325_v34 = vld [vmem:[%s6903_s7 + $0x1bc] ss:$0 sps:$4 sm:$0x11]  }
 0x7f4   : > { %4577 = vmatprep.subr.bf16.mxu1 %v5400_v19  ;;  %v3862_v63 = vand.u32 %v5325_v34, %v6521_v40 }
 0x7f7   : > { %4578 = vmatpush3.bf16.msra.mxu1 %v3092_v20  ;;  %v3836_v20 = vrot.slane %v6551_v61, 7 }
 0x7f8   : > { %4583 = vmatprep.subr.bf16.mxu1 %v5400_v19 }
 0x7fa   : > { %4580 = vmatmul.mubr.msk.bf16.vlgmr.msra.gmra.mrb[20].mxu1 %vm2698_vm11, %v3066_v16 }
 0x7fb   : > { %4584 = vmatpush3.bf16.msra.mxu1 %v5286_v27  ;;  %4591 = vmatprep.mubr.msk.bf16.mxu1 %vm5401_vm3, %v5400_v19  ;;  %v2669_v27 = vld [vmem:[%s6904_s8] sm:$0x1] }
 0x7fc   : > { %4585 = vmatprep.subr.bf16.mxu1 %v5400_v19 }
 0x7ff   : > { %4586 = vmatpush3.bf16.msra.mxu1 %v5287_v13 }
 0x800   : > { %4587 = vmatprep.subr.bf16.mxu1 %v5400_v19 }
 0x803   : > { %4588 = vmatpush3.bf16.msra.mxu1 %v5288_v24 }
 0x804   : > { %4589 = vmatprep.subr.bf16.mxu1 %v5400_v19 }
 0x807   : > { %4590 = vmatpush3.bf16.msra.mxu1 %v3169_v35 }
 0x808   : > { %4595 = vmatprep.subr.bf16.mxu1 %v5400_v19 }
 0x80a   : > { %4592 = vmatmul.mubr.msk.bf16.vlgmr.msra.gmra.mrb[20].mxu1 %vm2698_vm11, %v3143_v50 }
 0x80b   : > { %4596 = vmatpush3.bf16.msra.mxu1 %v5290_v15  ;;  %4603 = vmatprep.mubr.msk.bf16.mxu1 %vm5401_vm3, %v5400_v19 }
 0x80c   : > { %4597 = vmatprep.subr.bf16.mxu1 %v5400_v19 }
 0x80f   : > { %4598 = vmatpush3.bf16.msra.mxu1 %v5291_v28 }
 0x810   : > { %4599 = vmatprep.subr.bf16.mxu1 %v5400_v19 }
 0x813   : > { %4600 = vmatpush3.bf16.msra.mxu1 %v5292_v49 }
 0x814   : > { %4601 = vmatprep.subr.bf16.mxu1 %v5400_v19 }
 0x817   : > { %4602 = vmatpush3.bf16.msra.mxu1 %v3246_v57 }
 0x818   : > { %4607 = vmatprep.subr.bf16.mxu1 %v5400_v19 }
 0x81a   : > { %4604 = vmatmul.mubr.msk.bf16.vlgmr.msra.gmra.mrb[20].mxu1 %vm2698_vm11, %v3220_v39 }
 0x81b   : > { %4608 = vmatpush3.bf16.msra.mxu1 %v5294_v26  ;;  %4615 = vmatprep.mubr.msk.bf16.mxu1 %vm5401_vm3, %v5400_v19 }
 0x81c   : > { %4609 = vmatprep.subr.bf16.mxu1 %v5400_v19 }
 0x81f   : > { %4610 = vmatpush3.bf16.msra.mxu1 %v5295_v7 }
 0x820   : > { %4611 = vmatprep.subr.bf16.mxu1 %v5400_v19 }
 0x823   : > { %4612 = vmatpush3.bf16.msra.mxu1 %v5296_v41 }
 0x824   : > { %4613 = vmatprep.subr.bf16.mxu1 %v5400_v19 }
 0x827   : > { %4614 = vmatpush3.bf16.msra.mxu1 %v3323_v18 }
 0x828   : > { %4619 = vmatprep.subr.bf16.mxu1 %v5400_v19 }
 0x82a   : > { %4616 = vmatmul.mubr.msk.bf16.vlgmr.msra.gmra.mrb[20].mxu1 %vm2698_vm11, %v3297_v32 }
 0x82b   : > { %4620 = vmatpush3.bf16.msra.mxu1 %v5298_v23  ;;  %4627 = vmatprep.mubr.msk.bf16.mxu1 %vm5401_vm3, %v5400_v19 }
 0x82c   : > { %4621 = vmatprep.subr.bf16.mxu1 %v5400_v19 }
 0x82f   : > { %4622 = vmatpush3.bf16.msra.mxu1 %v5299_v14 }
 0x830   : > { %4623 = vmatprep.subr.bf16.mxu1 %v5400_v19 }
 0x833   : > { %4624 = vmatpush3.bf16.msra.mxu1 %v5300_v29 }
 0x834   : > { %4625 = vmatprep.subr.bf16.mxu1 %v5400_v19 }
 0x837   : > { %4626 = vmatpush3.bf16.msra.mxu1 %v3400_v33 }
 0x838   : > { %4631 = vmatprep.subr.bf16.mxu1 %v5400_v19 }
 0x83a   : > { %4628 = vmatmul.mubr.msk.bf16.vlgmr.msra.gmra.mrb[20].mxu1 %vm2698_vm11, %v3374_v36 }
 0x83b   : > { %4632 = vmatpush3.bf16.msra.mxu1 %v5302_v37  ;;  %4639 = vmatprep.mubr.msk.bf16.mxu1 %vm5401_vm3, %v5400_v19 }
 0x83c   : > { %4633 = vmatprep.subr.bf16.mxu1 %v5400_v19 }
 0x83f   : > { %4634 = vmatpush3.bf16.msra.mxu1 %v5303_v38 }
 0x840   : > { %4635 = vmatprep.subr.bf16.mxu1 %v5400_v19 }
 0x843   : > { %4636 = vmatpush3.bf16.msra.mxu1 %v5304_v42 }
 0x844   : > { %4637 = vmatprep.subr.bf16.mxu1 %v5400_v19 }
 0x847   : > { %4638 = vmatpush3.bf16.msra.mxu1 %v3477_v45 }
 0x848   : > { %4643 = vmatprep.subr.bf16.mxu1 %v5400_v19 }
 0x84a   : > { %4640 = vmatmul.mubr.msk.bf16.vlgmr.msra.gmra.mrb[20].mxu1 %vm2698_vm11, %v3451_v53 }
 0x84b   : > { %4644 = vmatpush3.bf16.msra.mxu1 %v5306_v48  ;;  %4651 = vmatprep.mubr.msk.bf16.mxu1 %vm5401_vm3, %v5400_v19 }
 0x84c   : > { %4645 = vmatprep.subr.bf16.mxu1 %v5400_v19 }
 0x84f   : > { %4646 = vmatpush3.bf16.msra.mxu1 %v5307_v25 }
 0x850   : > { %4647 = vmatprep.subr.bf16.mxu1 %v5400_v19 }
 0x853   : > { %4648 = vmatpush3.bf16.msra.mxu1 %v5308_v21 }
 0x854   : > { %4649 = vmatprep.subr.bf16.mxu1 %v5400_v19 }
 0x857   : > { %4650 = vmatpush3.bf16.msra.mxu1 %v3554_v55 }
 0x858   : > { %4655 = vmatprep.subr.bf16.mxu1 %v5400_v19 }
 0x85a   : > { %4652 = vmatmul.mubr.msk.bf16.vlgmr.msra.gmra.mrb[20].mxu1 %vm2698_vm11, %v3528_v60 }
 0x85b   : > { %4656 = vmatpush3.bf16.msra.mxu1 %v5310_v59  ;;  %4663 = vmatprep.mubr.msk.bf16.mxu1 %vm5401_vm3, %v5400_v19 }
 0x85c   : > { %4657 = vmatprep.subr.bf16.mxu1 %v5400_v19 }
 0x85f   : > { %4658 = vmatpush3.bf16.msra.mxu1 %v5311_v9 }
 0x860   : > { %4659 = vmatprep.subr.bf16.mxu1 %v5400_v19 }
 0x863   : > { %4660 = vmatpush3.bf16.msra.mxu1 %v5312_v22 }
 0x864   : > { %4661 = vmatprep.subr.bf16.mxu1 %v5400_v19 }
 0x867   : > { %4662 = vmatpush3.bf16.msra.mxu1 %v3631_v1 }
 0x868   : > { %4667 = vmatprep.subr.bf16.mxu1 %v5400_v19 }
 0x86a   : > { %4664 = vmatmul.mubr.msk.bf16.vlgmr.msra.gmra.mrb[20].mxu1 %vm2698_vm11, %v3605_v51 }
 0x86b   : > { %4668 = vmatpush3.bf16.msra.mxu1 %v5314_v0  ;;  %4675 = vmatprep.mubr.msk.bf16.mxu1 %vm5401_vm3, %v5400_v19 }
 0x86c   : > { %4669 = vmatprep.subr.bf16.mxu1 %v5400_v19 }
 0x86f   : > { %4670 = vmatpush3.bf16.msra.mxu1 %v5315_v52 }
 0x870   : > { %4671 = vmatprep.subr.bf16.mxu1 %v5400_v19 }
 0x873   : > { %4672 = vmatpush3.bf16.msra.mxu1 %v5316_v62 }
 0x874   : > { %4673 = vmatprep.subr.bf16.mxu1 %v5400_v19 }
 0x877   : > { %4674 = vmatpush3.bf16.msra.mxu1 %v3708_v3 }
 0x878   : > { %4679 = vmatprep.subr.bf16.mxu1 %v5400_v19 }
 0x87a   : > { %4676 = vmatmul.mubr.msk.bf16.vlgmr.msra.gmra.mrb[20].mxu1 %vm2698_vm11, %v3682_v5 }
 0x87b   : > { %4680 = vmatpush3.bf16.msra.mxu1 %v5318_v4  ;;  %4687 = vmatprep.mubr.msk.bf16.mxu1 %vm5401_vm3, %v5400_v19 }
 0x87c   : > { %4681 = vmatprep.subr.bf16.mxu1 %v5400_v19 }
 0x87f   : > { %4682 = vmatpush3.bf16.msra.mxu1 %v5319_v31 }
 0x880   : > { %4683 = vmatprep.subr.bf16.mxu1 %v5400_v19 }
 0x883   : > { %4684 = vmatpush3.bf16.msra.mxu1 %v5320_v12 }
 0x884   : > { %4685 = vmatprep.subr.bf16.mxu1 %v5400_v19 }
 0x887   : > { %4686 = vmatpush3.bf16.msra.mxu1 %v3785_v10 }
 0x888   : > { %4691 = vmatprep.subr.bf16.mxu1 %v5400_v19 }
 0x88a   : > { %4688 = vmatmul.mubr.msk.bf16.vlgmr.msra.gmra.mrb[20].mxu1 %vm2698_vm11, %v3759_v56 }
 0x88b   : > { %4692 = vmatpush3.bf16.msra.mxu1 %v5322_v11  ;;  %4699 = vmatprep.mubr.msk.bf16.mxu1 %vm5401_vm3, %v5400_v19 }
 0x88c   : > { %4693 = vmatprep.subr.bf16.mxu1 %v5400_v19 }
 0x88f   : > { %4694 = vmatpush3.bf16.msra.mxu1 %v5323_v8 }
 0x890   : > { %4695 = vmatprep.subr.bf16.mxu1 %v5400_v19 }
 0x893   : > { %4696 = vmatpush3.bf16.msra.mxu1 %v5324_v43 }
 0x894   : > { %4697 = vmatprep.subr.bf16.mxu1 %v5400_v19 }
 0x897   : > { %4698 = vmatpush3.bf16.msra.mxu1 %v3862_v63 }
 0x89a   : > { %4700 = vmatmul.mubr.msk.bf16.vlgmr.msra.gmra.mrb[20].mxu1 %vm2698_vm11, %v3836_v20 }
 0x96d   : > { %v3898_v16 = vpop.f32.mrb[20].mxu1 }
 0x96e   : > { %v4703_v13 = vadd.f32 %v3898_v16, %v2669_v27  ;;  %v4701_v24 = vpop.f32.mrb[21].mxu1 }
 0x96f   : > { %v3901_v19 = vpop.f32.mrb[22].mxu1 }
 0x970   : > { %3905 = vst [vmem:[%s322_s14] sm:$0x1] %v4703_v13  ;;  %v4702_v40 = vpop.f32.mrb[23].mxu1 }
 0x971   : > { %5339 = shalt.err (!%p5336_p3)
}
 0x972   : > { %s5340_s16 = scalar_lea.hbm %s6854_s24, 16  ;;  %s5344_s14 = scalar_lea.hbm %s6905_s9, 32 }
 0x973   : > { %p5341_p4 = scmp.ne.s32.totalorder %s6854_s24, %s5340_s16  ;;  %p5345_p9 = scmp.lt.u32.totalorder %s6854_s24, %s6905_s9 }
 0x974   : > { %p5346_p10 = scmp.lt.u32.totalorder %s5344_s14, %s5340_s16  ;;  %p5348_p12 = scmp.lt.u32.totalorder %s5340_s16, %s6854_s24 }
 0x975   : > { %p5342_p7 = pnand %p5341_p4, %p5496_p5 }
 0x976   : > { %p5347_p11 = por %p5346_p10, %p5345_p9 }
 0x977   : > { %p5343_p8 = pneg %p5342_p7 }
 0x978   : > { %p5349_p13 = por %p5348_p12, %p5347_p11 }
 0x97a   : > { %p5350_p0 = pnand %p5349_p13, %p5343_p8 }
 0x97c   : > { %5353 = shalt.err (!%p5350_p0)
}
 0x97d   : > { %4776 = dma.vmem_to_hbm [thread:$0]  (%p5496_p5), %s6856_s22, 16, %s6854_s24, %s3907_s25  }
 0x97e PF: > { %p4782_p1 = scmp.ge.s32.totalorder %s5388_s12, 2  ;;  %s3931_s13 = sand.u32 1, %s5376_s30  }
 0x97f   : > { %s3932_s29 = scalar_lea.sflag [#allocation3], %s3931_s13 }
 0x980   : > { %p4779_p2 = pnand %p4782_p1, %p5500_p6 }
 0x982   : > { %5371 = dma.done.wait (!%p4779_p2), %s3932_s29, 16  }
 0x983   : > { %5373 = vsyncadd (!%p4779_p2), %s3932_s29, 4294967280  ;;  %p19_p3 = scmp.ge.s32.totalorder %s5483_s15, 4   ;;  %s6912_s30 = smov %s5380_s10 }
 0x984   : > { %s6913_s10 = smov %s5384_s11  ;;  %s6914_s11 = smov %s5494_s18 }
 0x985   : > { %s6915_s12 = smov %s5483_s15  ;;  %21 = sbr.rel (!%p19_p3) target bundleno = 3 (0x3), region = 106 }
 0x98c   :  { %3936 = vsyncpa [#allocation3], 1 }
 0x98d   :  { %3938 = vsyncpa [#allocation3 + $0x1], 1 }

</bundles_post_ra>
